<compile_context>
chip_gen: v7x
topology: tpu7x:2x2x1
jax: 0.10.0
libtpu: 0.0.40
codegen_flags: <defaults>
</compile_context>

<pallas_src>
import functools
import math

import jax
import jax.numpy as jnp
from jax.experimental import pallas as pl
from jax.experimental.pallas import tpu as pltpu

# ----------------------------- hyperparameters ------------------------------
MEL_FREQ = 8                 # hp.mel_freq
POSTNET_EMBED = 32           # hp.postnet_embedding_size
KERNEL_SIZE = 5              # hp.postnet_kernel_size
N_LAYERS = 6
BN_EPS = 1e-5

BATCH = 2
SEQ = 16

CIN_P = 32                   # contraction-dim padding (max real Cin; sublane multiple)
COUT_P = 128                 # lane-dense output-channel padding (vreg lane width)


# ------------------------------- Pallas kernel ------------------------------
def fused_postnet_kernel(x_ref, w_ref, ss_ref, o_ref, win_ref,
                         *, k, b, t, cin_p, n_layers):
    """All 6 (Conv1d + BN affine + tanh) layers fused; whole batch per call.

    x_ref:   (B*T, CIN_P)             channel-padded, batch-folded input (f32)
    w_ref:   (L, k*CIN_P, COUT_P)     merged-tap conv weights (bf16)
    ss_ref:  (L, 2, COUT_P)           per-layer [scale, shift] f32 (conv bias folded)
    o_ref:   (B*T, COUT_P)            lane-dense output (f32)
    win_ref: (B*T, k*CIN_P)           VMEM im2col scratch
    """
    pad = (k - 1) // 2

    # Zero the im2col scratch once (single grid step).  Cells where a tap would
    # read the conv's zero time-padding are never overwritten below, so they
    # stay zero for every layer -> implements the length-preserving padding.
    win_ref[...] = jnp.zeros_like(win_ref)

    h = x_ref[...].astype(jnp.float32)              # (B*T, CIN_P)

    for layer in range(n_layers):                   # static unroll (6 layers)
        # Scatter the k shifted copies of the activation into the im2col
        # scratch.  All offsets are static: lane offsets are multiples of 32,
        # per-batch row offsets are multiples of 8 (T=16); out-of-range rows
        # (the halo) keep their initial zeros.  Per-batch handling keeps the
        # time halos of different batch elements separate.
        for bi in range(b):
            for d in range(k):
                off = d - pad                       # tap offset in time
                length = t - abs(off)
                dst = bi * t + max(0, -off)
                src = bi * t + max(0, off)
                win_ref[dst:dst + length, d * cin_p:(d + 1) * cin_p] = \
                    h[src:src + length, :cin_p]

        # One merged-tap MXU matmul per layer:
        #   (B*T, k*CIN_P) bf16  @  (k*CIN_P, COUT_P) bf16  -> f32 accumulate.
        acc = jnp.dot(win_ref[...].astype(jnp.bfloat16), w_ref[layer],
                      preferred_element_type=jnp.float32)

        ss = ss_ref[layer]                          # (2, COUT_P) f32
        y = acc * ss[0:1, :] + ss[1:2, :]           # BN affine (+ folded conv bias), f32
        if layer < n_layers - 1:                    # tanh on layers 1..5 only
            y = jnp.tanh(y)
        h = y                                       # padded lanes stay exactly 0

    o_ref[...] = h.astype(o_ref.dtype)


@jax.jit
def postnet_forward(x, w_all, ss_all):
    """x: (B, T, mel_freq) -> (B, T, mel_freq). One fused pallas_call."""
    B, T, mel = x.shape
    n_layers, kcin, cout_p = w_all.shape
    cin_p = CIN_P
    k = kcin // cin_p

    # Pad input channels once to the contraction granule and fold batch rows.
    x_p = jnp.pad(x, ((0, 0), (0, 0), (0, cin_p - mel))).reshape(B * T, cin_p)

    kern = functools.partial(fused_postnet_kernel, k=k, b=B, t=T,
                             cin_p=cin_p, n_layers=n_layers)
    out_p = pl.pallas_call(
        kern,
        out_shape=jax.ShapeDtypeStruct((B * T, cout_p), x.dtype),
        grid_spec=pltpu.PrefetchScalarGridSpec(
            num_scalar_prefetch=0,
            grid=(1,),
            in_specs=[
                pl.BlockSpec((B * T, cin_p), lambda i: (0, 0)),
                pl.BlockSpec((n_layers, kcin, cout_p), lambda i: (0, 0, 0)),
                pl.BlockSpec((n_layers, 2, cout_p), lambda i: (0, 0, 0)),
            ],
            out_specs=pl.BlockSpec((B * T, cout_p), lambda i: (0, 0)),
            scratch_shapes=[pltpu.VMEM((B * T, k * cin_p), jnp.float32)],
        ),
        compiler_params=pltpu.CompilerParams(
            dimension_semantics=("arbitrary",),
            # vmem_limit_bytes intentionally not set: footprint is a few
            # hundred KB, well under the default scoped limit.
        ),
    )(x_p, w_all, ss_all)

    return out_p.reshape(B, T, cout_p)[:, :, :mel]


# ------------------------------ parameter setup -----------------------------
def make_layer_params(key, cin, cout, k):
    """Deterministic synthetic params mimicking Conv1d + BatchNorm1d (eval)."""
    kw, kb, kg, kbeta, km, kv = jax.random.split(key, 6)
    # PyTorch Conv1d weight is (Cout, Cin, k); store tap-major (k, Cin, Cout).
    bound = 1.0 / math.sqrt(cin * k)
    w_torch = jax.random.uniform(kw, (cout, cin, k), jnp.float32, -bound, bound)
    w = jnp.transpose(w_torch, (2, 1, 0))                       # (k, Cin, Cout)
    b = jax.random.uniform(kb, (cout,), jnp.float32, -bound, bound)
    gamma = 1.0 + 0.1 * jax.random.normal(kg, (cout,), jnp.float32)
    beta = 0.1 * jax.random.normal(kbeta, (cout,), jnp.float32)
    run_mean = 0.1 * jax.random.normal(km, (cout,), jnp.float32)
    run_var = 1.0 + 0.1 * jax.random.uniform(kv, (cout,), jnp.float32)
    # Fold BN (inference) into per-channel scale/shift.
    scale = gamma / jnp.sqrt(run_var + BN_EPS)
    shift = beta - run_mean * scale
    return dict(w=w, b=b, scale=scale, shift=shift)


def build_postnet_params(key):
    dims = [(MEL_FREQ, POSTNET_EMBED)] + [(POSTNET_EMBED, POSTNET_EMBED)] * 4 \
         + [(POSTNET_EMBED, MEL_FREQ)]
    keys = jax.random.split(key, len(dims))
    return [make_layer_params(k, cin, cout, KERNEL_SIZE)
            for k, (cin, cout) in zip(keys, dims)]


def pack_params_for_kernel(params_list, k, cin_p, cout_p):
    """Pad Cin->CIN_P / Cout->COUT_P, merge taps, fold bias, cast weights bf16.

    Padded output lanes get scale=shift=0, so they stay exactly 0 through every
    layer (tanh(0)=0); padded contraction rows are zero weights.
    """
    w_merged, ss = [], []
    for p in params_list:
        cin, cout = p["w"].shape[1], p["w"].shape[2]
        w_p = jnp.zeros((k, cin_p, cout_p), jnp.float32).at[:, :cin, :cout].set(p["w"])
        w_merged.append(w_p.reshape(k * cin_p, cout_p).astype(jnp.bfloat16))
        # y = (acc + b)*scale + shift  ==  acc*scale + (shift + b*scale)
        scale_p = jnp.zeros((cout_p,), jnp.float32).at[:cout].set(p["scale"])
        shift_f = p["shift"] + p["b"] * p["scale"]
        shift_p = jnp.zeros((cout_p,), jnp.float32).at[:cout].set(shift_f)
        ss.append(jnp.stack([scale_p, shift_p]))                # (2, COUT_P)
    # (L, k*CIN_P, COUT_P) bf16, (L, 2, COUT_P) f32
    return jnp.stack(w_merged), jnp.stack(ss)


# ------------------------------- reference ----------------------------------
def postnet_reference(x, params_list, operand_dtype=jnp.float32):
    """Pure-JAX reference (PyTorch eval semantics).  `operand_dtype` controls
    the matmul operand precision (f32 = exact module math; bf16 = mirrors the
    kernel's quantization points, still f32 accumulation)."""
    h = x
    n = len(params_list)
    pad = (KERNEL_SIZE - 1) // 2
    for i, p in enumerate(params_list):
        hp_ = jnp.pad(h, ((0, 0), (pad, pad), (0, 0)))
        T = h.shape[1]
        w = p["w"].astype(operand_dtype)                         # (k, Cin, Cout)
        acc = jnp.zeros((h.shape[0], T, p["w"].shape[2]), jnp.float32)
        for d in range(KERNEL_SIZE):
            lhs = hp_[:, d:d + T, :].astype(operand_dtype)
            acc = acc + jnp.einsum("btc,cd->btd", lhs, w[d],
                                   preferred_element_type=jnp.float32)
        y = acc + p["b"]
        y = y * p["scale"] + p["shift"]
        if i < n - 1:
            y = jnp.tanh(y)
        h = y
    return h


# ----------------------------------- main ------------------------------------
if __name__ == "__main__":
    key = jax.random.PRNGKey(0)
    k_x, k_p = jax.random.split(key)
    x = jax.random.normal(k_x, (BATCH, SEQ, MEL_FREQ), jnp.float32)
    params = build_postnet_params(k_p)
    w_all, ss_all = pack_params_for_kernel(params, KERNEL_SIZE, CIN_P, COUT_P)

    out = jax.block_until_ready(postnet_forward(x, w_all, ss_all))
    assert out.shape == (BATCH, SEQ, MEL_FREQ), out.shape

    # Tight check vs. a reference with the same bf16 quantization points.
    ref_bf16 = postnet_reference(x, params, operand_dtype=jnp.bfloat16)
    assert jnp.allclose(out, ref_bf16, atol=1e-3, rtol=1e-3), \
        float(jnp.max(jnp.abs(out - ref_bf16)))

    # Loose check vs. the exact f32 module math (bounds bf16 operand error).
    ref_f32 = postnet_reference(x, params, operand_dtype=jnp.float32)
    assert jnp.allclose(out, ref_f32, atol=5e-2, rtol=5e-2), \
        float(jnp.max(jnp.abs(out - ref_f32)))

    print("KERNEL_OK")
</pallas_src>

<mosaic_0001>
module attributes {stable_mosaic.version = 11 : i64} {
  func.func @fused_postnet_kernel(%arg0: i32, %arg1: memref<32x32xf32, #tpu.memory_space<vmem>>, %arg2: memref<6x160x128xbf16, #tpu.memory_space<vmem>>, %arg3: memref<6x2x128xf32, #tpu.memory_space<vmem>>, %arg4: memref<32x128xf32, #tpu.memory_space<vmem>>, %arg5: memref<32x160xf32, #tpu.memory_space<vmem>>) attributes {dimension_semantics = [#tpu.dimension_semantics<arbitrary>], iteration_bounds = array<i64: 1>, scalar_prefetch = 0 : i64, scratch_operands = 1 : i64, tpu.core_type = #tpu.core_type<tc>, window_params = [{pipeline_mode = #tpu.pipeline_mode<synchronous>, transform_indices = @transform_0, window_bounds = array<i64: 32, 32>}, {pipeline_mode = #tpu.pipeline_mode<synchronous>, transform_indices = @transform_1, window_bounds = array<i64: 6, 160, 128>}, {pipeline_mode = #tpu.pipeline_mode<synchronous>, transform_indices = @transform_2, window_bounds = array<i64: 6, 2, 128>}, {pipeline_mode = #tpu.pipeline_mode<synchronous>, transform_indices = @transform_3, window_bounds = array<i64: 32, 128>}]} {
    %cst = arith.constant 0.000000e+00 : f32
    %0 = vector.broadcast %cst : f32 to vector<32x160xf32>
    %c0 = arith.constant 0 : index
    %c0_0 = arith.constant 0 : index
    %1 = vector.load %arg5[%c0, %c0_0] : memref<32x160xf32, #tpu.memory_space<vmem>>, vector<32x160xf32>
    tpu.vector_store %arg5[%c0, %c0_0], %0 {strides = array<i32>} : memref<32x160xf32, #tpu.memory_space<vmem>>, vector<32x160xf32>,
    %c0_1 = arith.constant 0 : index
    %c0_2 = arith.constant 0 : index
    %2 = vector.load %arg1[%c0_1, %c0_2] : memref<32x32xf32, #tpu.memory_space<vmem>>, vector<32x32xf32>
    %3 = vector.extract_strided_slice %2 {offsets = [0, 0], sizes = [14, 32], strides = [1, 1]} : vector<32x32xf32> to vector<14x32xf32>
    %c2 = arith.constant 2 : index
    %c0_3 = arith.constant 0 : index
    %4 = vector.load %arg5[%c2, %c0_3] : memref<32x160xf32, #tpu.memory_space<vmem>>, vector<14x32xf32>
    tpu.vector_store %arg5[%c2, %c0_3], %3 {strides = array<i32>} : memref<32x160xf32, #tpu.memory_space<vmem>>, vector<14x32xf32>,
    %5 = vector.extract_strided_slice %2 {offsets = [0, 0], sizes = [15, 32], strides = [1, 1]} : vector<32x32xf32> to vector<15x32xf32>
    %c1 = arith.constant 1 : index
    %c32 = arith.constant 32 : index
    %6 = vector.load %arg5[%c1, %c32] : memref<32x160xf32, #tpu.memory_space<vmem>>, vector<15x32xf32>
    tpu.vector_store %arg5[%c1, %c32], %5 {strides = array<i32>} : memref<32x160xf32, #tpu.memory_space<vmem>>, vector<15x32xf32>,
    %7 = vector.extract_strided_slice %2 {offsets = [0, 0], sizes = [16, 32], strides = [1, 1]} : vector<32x32xf32> to vector<16x32xf32>
    %c0_4 = arith.constant 0 : index
    %c64 = arith.constant 64 : index
    %8 = vector.load %arg5[%c0_4, %c64] : memref<32x160xf32, #tpu.memory_space<vmem>>, vector<16x32xf32>
    tpu.vector_store %arg5[%c0_4, %c64], %7 {strides = array<i32>} : memref<32x160xf32, #tpu.memory_space<vmem>>, vector<16x32xf32>,
    %9 = vector.extract_strided_slice %2 {offsets = [1, 0], sizes = [15, 32], strides = [1, 1]} : vector<32x32xf32> to vector<15x32xf32>
    %c0_5 = arith.constant 0 : index
    %c96 = arith.constant 96 : index
    %10 = vector.load %arg5[%c0_5, %c96] : memref<32x160xf32, #tpu.memory_space<vmem>>, vector<15x32xf32>
    tpu.vector_store %arg5[%c0_5, %c96], %9 {strides = array<i32>} : memref<32x160xf32, #tpu.memory_space<vmem>>, vector<15x32xf32>,
    %11 = vector.extract_strided_slice %2 {offsets = [2, 0], sizes = [14, 32], strides = [1, 1]} : vector<32x32xf32> to vector<14x32xf32>
    %c0_6 = arith.constant 0 : index
    %c128 = arith.constant 128 : index
    %12 = vector.load %arg5[%c0_6, %c128] : memref<32x160xf32, #tpu.memory_space<vmem>>, vector<14x32xf32>
    tpu.vector_store %arg5[%c0_6, %c128], %11 {strides = array<i32>} : memref<32x160xf32, #tpu.memory_space<vmem>>, vector<14x32xf32>,
    %13 = vector.extract_strided_slice %2 {offsets = [16, 0], sizes = [14, 32], strides = [1, 1]} : vector<32x32xf32> to vector<14x32xf32>
    %c18 = arith.constant 18 : index
    %c0_7 = arith.constant 0 : index
    %14 = vector.load %arg5[%c18, %c0_7] : memref<32x160xf32, #tpu.memory_space<vmem>>, vector<14x32xf32>
    tpu.vector_store %arg5[%c18, %c0_7], %13 {strides = array<i32>} : memref<32x160xf32, #tpu.memory_space<vmem>>, vector<14x32xf32>,
    %15 = vector.extract_strided_slice %2 {offsets = [16, 0], sizes = [15, 32], strides = [1, 1]} : vector<32x32xf32> to vector<15x32xf32>
    %c17 = arith.constant 17 : index
    %c32_8 = arith.constant 32 : index
    %16 = vector.load %arg5[%c17, %c32_8] : memref<32x160xf32, #tpu.memory_space<vmem>>, vector<15x32xf32>
    tpu.vector_store %arg5[%c17, %c32_8], %15 {strides = array<i32>} : memref<32x160xf32, #tpu.memory_space<vmem>>, vector<15x32xf32>,
    %17 = vector.extract_strided_slice %2 {offsets = [16, 0], sizes = [16, 32], strides = [1, 1]} : vector<32x32xf32> to vector<16x32xf32>
    %c16 = arith.constant 16 : index
    %c64_9 = arith.constant 64 : index
    %18 = vector.load %arg5[%c16, %c64_9] : memref<32x160xf32, #tpu.memory_space<vmem>>, vector<16x32xf32>
    tpu.vector_store %arg5[%c16, %c64_9], %17 {strides = array<i32>} : memref<32x160xf32, #tpu.memory_space<vmem>>, vector<16x32xf32>,
    %19 = vector.extract_strided_slice %2 {offsets = [17, 0], sizes = [15, 32], strides = [1, 1]} : vector<32x32xf32> to vector<15x32xf32>
    %c16_10 = arith.constant 16 : index
    %c96_11 = arith.constant 96 : index
    %20 = vector.load %arg5[%c16_10, %c96_11] : memref<32x160xf32, #tpu.memory_space<vmem>>, vector<15x32xf32>
    tpu.vector_store %arg5[%c16_10, %c96_11], %19 {strides = array<i32>} : memref<32x160xf32, #tpu.memory_space<vmem>>, vector<15x32xf32>,
    %21 = vector.extract_strided_slice %2 {offsets = [18, 0], sizes = [14, 32], strides = [1, 1]} : vector<32x32xf32> to vector<14x32xf32>
    %c16_12 = arith.constant 16 : index
    %c128_13 = arith.constant 128 : index
    %22 = vector.load %arg5[%c16_12, %c128_13] : memref<32x160xf32, #tpu.memory_space<vmem>>, vector<14x32xf32>
    tpu.vector_store %arg5[%c16_12, %c128_13], %21 {strides = array<i32>} : memref<32x160xf32, #tpu.memory_space<vmem>>, vector<14x32xf32>,
    %c0_14 = arith.constant 0 : index
    %c0_15 = arith.constant 0 : index
    %23 = vector.load %arg5[%c0_14, %c0_15] : memref<32x160xf32, #tpu.memory_space<vmem>>, vector<32x160xf32>
    %24 = arith.truncf %23 : vector<32x160xf32> to vector<32x160xbf16>
    %c0_16 = arith.constant 0 : index
    %c0_17 = arith.constant 0 : index
    %c0_18 = arith.constant 0 : index
    %25 = vector.load %arg2[%c0_16, %c0_17, %c0_18] : memref<6x160x128xbf16, #tpu.memory_space<vmem>>, vector<1x160x128xbf16>
    %26 = vector.shape_cast %25 : vector<1x160x128xbf16> to vector<160x128xbf16>
    %cst_19 = arith.constant dense<0.000000e+00> : vector<32x128xf32>
    %27 = tpu.matmul %24, %26, %cst_19 {dimension_numbers = #tpu.dot_dimension_numbers<[1], [0], [0], [1], [0, 0, 1, 1], [], []>} : vector<32x160xbf16>, vector<160x128xbf16>, vector<32x128xf32> -> vector<32x128xf32>
    %c0_20 = arith.constant 0 : index
    %c0_21 = arith.constant 0 : index
    %c0_22 = arith.constant 0 : index
    %28 = vector.load %arg3[%c0_20, %c0_21, %c0_22] : memref<6x2x128xf32, #tpu.memory_space<vmem>>, vector<1x2x128xf32>
    %29 = vector.shape_cast %28 : vector<1x2x128xf32> to vector<2x128xf32>
    %30 = vector.extract_strided_slice %29 {offsets = [0, 0], sizes = [1, 128], strides = [1, 1]} : vector<2x128xf32> to vector<1x128xf32>
    %31 = vector.broadcast %30 : vector<1x128xf32> to vector<32x128xf32>
    %32 = arith.mulf %27, %31 : vector<32x128xf32>
    %33 = vector.extract_strided_slice %29 {offsets = [1, 0], sizes = [1, 128], strides = [1, 1]} : vector<2x128xf32> to vector<1x128xf32>
    %34 = vector.broadcast %33 : vector<1x128xf32> to vector<32x128xf32>
    %35 = arith.addf %32, %34 : vector<32x128xf32>
    %36 = math.tanh %35 : vector<32x128xf32>
    %37 = vector.extract_strided_slice %36 {offsets = [0, 0], sizes = [14, 32], strides = [1, 1]} : vector<32x128xf32> to vector<14x32xf32>
    %c2_23 = arith.constant 2 : index
    %c0_24 = arith.constant 0 : index
    %38 = vector.load %arg5[%c2_23, %c0_24] : memref<32x160xf32, #tpu.memory_space<vmem>>, vector<14x32xf32>
    tpu.vector_store %arg5[%c2_23, %c0_24], %37 {strides = array<i32>} : memref<32x160xf32, #tpu.memory_space<vmem>>, vector<14x32xf32>,
    %39 = vector.extract_strided_slice %36 {offsets = [0, 0], sizes = [15, 32], strides = [1, 1]} : vector<32x128xf32> to vector<15x32xf32>
    %c1_25 = arith.constant 1 : index
    %c32_26 = arith.constant 32 : index
    %40 = vector.load %arg5[%c1_25, %c32_26] : memref<32x160xf32, #tpu.memory_space<vmem>>, vector<15x32xf32>
    tpu.vector_store %arg5[%c1_25, %c32_26], %39 {strides = array<i32>} : memref<32x160xf32, #tpu.memory_space<vmem>>, vector<15x32xf32>,
    %41 = vector.extract_strided_slice %36 {offsets = [0, 0], sizes = [16, 32], strides = [1, 1]} : vector<32x128xf32> to vector<16x32xf32>
    %c0_27 = arith.constant 0 : index
    %c64_28 = arith.constant 64 : index
    %42 = vector.load %arg5[%c0_27, %c64_28] : memref<32x160xf32, #tpu.memory_space<vmem>>, vector<16x32xf32>
    tpu.vector_store %arg5[%c0_27, %c64_28], %41 {strides = array<i32>} : memref<32x160xf32, #tpu.memory_space<vmem>>, vector<16x32xf32>,
    %43 = vector.extract_strided_slice %36 {offsets = [1, 0], sizes = [15, 32], strides = [1, 1]} : vector<32x128xf32> to vector<15x32xf32>
    %c0_29 = arith.constant 0 : index
    %c96_30 = arith.constant 96 : index
    %44 = vector.load %arg5[%c0_29, %c96_30] : memref<32x160xf32, #tpu.memory_space<vmem>>, vector<15x32xf32>
    tpu.vector_store %arg5[%c0_29, %c96_30], %43 {strides = array<i32>} : memref<32x160xf32, #tpu.memory_space<vmem>>, vector<15x32xf32>,
    %45 = vector.extract_strided_slice %36 {offsets = [2, 0], sizes = [14, 32], strides = [1, 1]} : vector<32x128xf32> to vector<14x32xf32>
    %c0_31 = arith.constant 0 : index
    %c128_32 = arith.constant 128 : index
    %46 = vector.load %arg5[%c0_31, %c128_32] : memref<32x160xf32, #tpu.memory_space<vmem>>, vector<14x32xf32>
    tpu.vector_store %arg5[%c0_31, %c128_32], %45 {strides = array<i32>} : memref<32x160xf32, #tpu.memory_space<vmem>>, vector<14x32xf32>,
    %47 = vector.extract_strided_slice %36 {offsets = [16, 0], sizes = [14, 32], strides = [1, 1]} : vector<32x128xf32> to vector<14x32xf32>
    %c18_33 = arith.constant 18 : index
    %c0_34 = arith.constant 0 : index
    %48 = vector.load %arg5[%c18_33, %c0_34] : memref<32x160xf32, #tpu.memory_space<vmem>>, vector<14x32xf32>
    tpu.vector_store %arg5[%c18_33, %c0_34], %47 {strides = array<i32>} : memref<32x160xf32, #tpu.memory_space<vmem>>, vector<14x32xf32>,
    %49 = vector.extract_strided_slice %36 {offsets = [16, 0], sizes = [15, 32], strides = [1, 1]} : vector<32x128xf32> to vector<15x32xf32>
    %c17_35 = arith.constant 17 : index
    %c32_36 = arith.constant 32 : index
    %50 = vector.load %arg5[%c17_35, %c32_36] : memref<32x160xf32, #tpu.memory_space<vmem>>, vector<15x32xf32>
    tpu.vector_store %arg5[%c17_35, %c32_36], %49 {strides = array<i32>} : memref<32x160xf32, #tpu.memory_space<vmem>>, vector<15x32xf32>,
    %51 = vector.extract_strided_slice %36 {offsets = [16, 0], sizes = [16, 32], strides = [1, 1]} : vector<32x128xf32> to vector<16x32xf32>
    %c16_37 = arith.constant 16 : index
    %c64_38 = arith.constant 64 : index
    %52 = vector.load %arg5[%c16_37, %c64_38] : memref<32x160xf32, #tpu.memory_space<vmem>>, vector<16x32xf32>
    tpu.vector_store %arg5[%c16_37, %c64_38], %51 {strides = array<i32>} : memref<32x160xf32, #tpu.memory_space<vmem>>, vector<16x32xf32>,
    %53 = vector.extract_strided_slice %36 {offsets = [17, 0], sizes = [15, 32], strides = [1, 1]} : vector<32x128xf32> to vector<15x32xf32>
    %c16_39 = arith.constant 16 : index
    %c96_40 = arith.constant 96 : index
    %54 = vector.load %arg5[%c16_39, %c96_40] : memref<32x160xf32, #tpu.memory_space<vmem>>, vector<15x32xf32>
    tpu.vector_store %arg5[%c16_39, %c96_40], %53 {strides = array<i32>} : memref<32x160xf32, #tpu.memory_space<vmem>>, vector<15x32xf32>,
    %55 = vector.extract_strided_slice %36 {offsets = [18, 0], sizes = [14, 32], strides = [1, 1]} : vector<32x128xf32> to vector<14x32xf32>
    %c16_41 = arith.constant 16 : index
    %c128_42 = arith.constant 128 : index
    %56 = vector.load %arg5[%c16_41, %c128_42] : memref<32x160xf32, #tpu.memory_space<vmem>>, vector<14x32xf32>
    tpu.vector_store %arg5[%c16_41, %c128_42], %55 {strides = array<i32>} : memref<32x160xf32, #tpu.memory_space<vmem>>, vector<14x32xf32>,
    %c0_43 = arith.constant 0 : index
    %c0_44 = arith.constant 0 : index
    %57 = vector.load %arg5[%c0_43, %c0_44] : memref<32x160xf32, #tpu.memory_space<vmem>>, vector<32x160xf32>
    %58 = arith.truncf %57 : vector<32x160xf32> to vector<32x160xbf16>
    %c1_45 = arith.constant 1 : index
    %c0_46 = arith.constant 0 : index
    %c0_47 = arith.constant 0 : index
    %59 = vector.load %arg2[%c1_45, %c0_46, %c0_47] : memref<6x160x128xbf16, #tpu.memory_space<vmem>>, vector<1x160x128xbf16>
    %60 = vector.shape_cast %59 : vector<1x160x128xbf16> to vector<160x128xbf16>
    %cst_48 = arith.constant dense<0.000000e+00> : vector<32x128xf32>
    %61 = tpu.matmul %58, %60, %cst_48 {dimension_numbers = #tpu.dot_dimension_numbers<[1], [0], [0], [1], [0, 0, 1, 1], [], []>} : vector<32x160xbf16>, vector<160x128xbf16>, vector<32x128xf32> -> vector<32x128xf32>
    %c1_49 = arith.constant 1 : index
    %c0_50 = arith.constant 0 : index
    %c0_51 = arith.constant 0 : index
    %62 = vector.load %arg3[%c1_49, %c0_50, %c0_51] : memref<6x2x128xf32, #tpu.memory_space<vmem>>, vector<1x2x128xf32>
    %63 = vector.shape_cast %62 : vector<1x2x128xf32> to vector<2x128xf32>
    %64 = vector.extract_strided_slice %63 {offsets = [0, 0], sizes = [1, 128], strides = [1, 1]} : vector<2x128xf32> to vector<1x128xf32>
    %65 = vector.broadcast %64 : vector<1x128xf32> to vector<32x128xf32>
    %66 = arith.mulf %61, %65 : vector<32x128xf32>
    %67 = vector.extract_strided_slice %63 {offsets = [1, 0], sizes = [1, 128], strides = [1, 1]} : vector<2x128xf32> to vector<1x128xf32>
    %68 = vector.broadcast %67 : vector<1x128xf32> to vector<32x128xf32>
    %69 = arith.addf %66, %68 : vector<32x128xf32>
    %70 = math.tanh %69 : vector<32x128xf32>
    %71 = vector.extract_strided_slice %70 {offsets = [0, 0], sizes = [14, 32], strides = [1, 1]} : vector<32x128xf32> to vector<14x32xf32>
    %c2_52 = arith.constant 2 : index
    %c0_53 = arith.constant 0 : index
    %72 = vector.load %arg5[%c2_52, %c0_53] : memref<32x160xf32, #tpu.memory_space<vmem>>, vector<14x32xf32>
    tpu.vector_store %arg5[%c2_52, %c0_53], %71 {strides = array<i32>} : memref<32x160xf32, #tpu.memory_space<vmem>>, vector<14x32xf32>,
    %73 = vector.extract_strided_slice %70 {offsets = [0, 0], sizes = [15, 32], strides = [1, 1]} : vector<32x128xf32> to vector<15x32xf32>
    %c1_54 = arith.constant 1 : index
    %c32_55 = arith.constant 32 : index
    %74 = vector.load %arg5[%c1_54, %c32_55] : memref<32x160xf32, #tpu.memory_space<vmem>>, vector<15x32xf32>
    tpu.vector_store %arg5[%c1_54, %c32_55], %73 {strides = array<i32>} : memref<32x160xf32, #tpu.memory_space<vmem>>, vector<15x32xf32>,
    %75 = vector.extract_strided_slice %70 {offsets = [0, 0], sizes = [16, 32], strides = [1, 1]} : vector<32x128xf32> to vector<16x32xf32>
    %c0_56 = arith.constant 0 : index
    %c64_57 = arith.constant 64 : index
    %76 = vector.load %arg5[%c0_56, %c64_57] : memref<32x160xf32, #tpu.memory_space<vmem>>, vector<16x32xf32>
    tpu.vector_store %arg5[%c0_56, %c64_57], %75 {strides = array<i32>} : memref<32x160xf32, #tpu.memory_space<vmem>>, vector<16x32xf32>,
    %77 = vector.extract_strided_slice %70 {offsets = [1, 0], sizes = [15, 32], strides = [1, 1]} : vector<32x128xf32> to vector<15x32xf32>
    %c0_58 = arith.constant 0 : index
    %c96_59 = arith.constant 96 : index
    %78 = vector.load %arg5[%c0_58, %c96_59] : memref<32x160xf32, #tpu.memory_space<vmem>>, vector<15x32xf32>
    tpu.vector_store %arg5[%c0_58, %c96_59], %77 {strides = array<i32>} : memref<32x160xf32, #tpu.memory_space<vmem>>, vector<15x32xf32>,
    %79 = vector.extract_strided_slice %70 {offsets = [2, 0], sizes = [14, 32], strides = [1, 1]} : vector<32x128xf32> to vector<14x32xf32>
    %c0_60 = arith.constant 0 : index
    %c128_61 = arith.constant 128 : index
    %80 = vector.load %arg5[%c0_60, %c128_61] : memref<32x160xf32, #tpu.memory_space<vmem>>, vector<14x32xf32>
    tpu.vector_store %arg5[%c0_60, %c128_61], %79 {strides = array<i32>} : memref<32x160xf32, #tpu.memory_space<vmem>>, vector<14x32xf32>,
    %81 = vector.extract_strided_slice %70 {offsets = [16, 0], sizes = [14, 32], strides = [1, 1]} : vector<32x128xf32> to vector<14x32xf32>
    %c18_62 = arith.constant 18 : index
    %c0_63 = arith.constant 0 : index
    %82 = vector.load %arg5[%c18_62, %c0_63] : memref<32x160xf32, #tpu.memory_space<vmem>>, vector<14x32xf32>
    tpu.vector_store %arg5[%c18_62, %c0_63], %81 {strides = array<i32>} : memref<32x160xf32, #tpu.memory_space<vmem>>, vector<14x32xf32>,
    %83 = vector.extract_strided_slice %70 {offsets = [16, 0], sizes = [15, 32], strides = [1, 1]} : vector<32x128xf32> to vector<15x32xf32>
    %c17_64 = arith.constant 17 : index
    %c32_65 = arith.constant 32 : index
    %84 = vector.load %arg5[%c17_64, %c32_65] : memref<32x160xf32, #tpu.memory_space<vmem>>, vector<15x32xf32>
    tpu.vector_store %arg5[%c17_64, %c32_65], %83 {strides = array<i32>} : memref<32x160xf32, #tpu.memory_space<vmem>>, vector<15x32xf32>,
    %85 = vector.extract_strided_slice %70 {offsets = [16, 0], sizes = [16, 32], strides = [1, 1]} : vector<32x128xf32> to vector<16x32xf32>
    %c16_66 = arith.constant 16 : index
    %c64_67 = arith.constant 64 : index
    %86 = vector.load %arg5[%c16_66, %c64_67] : memref<32x160xf32, #tpu.memory_space<vmem>>, vector<16x32xf32>
    tpu.vector_store %arg5[%c16_66, %c64_67], %85 {strides = array<i32>} : memref<32x160xf32, #tpu.memory_space<vmem>>, vector<16x32xf32>,
    %87 = vector.extract_strided_slice %70 {offsets = [17, 0], sizes = [15, 32], strides = [1, 1]} : vector<32x128xf32> to vector<15x32xf32>
    %c16_68 = arith.constant 16 : index
    %c96_69 = arith.constant 96 : index
    %88 = vector.load %arg5[%c16_68, %c96_69] : memref<32x160xf32, #tpu.memory_space<vmem>>, vector<15x32xf32>
    tpu.vector_store %arg5[%c16_68, %c96_69], %87 {strides = array<i32>} : memref<32x160xf32, #tpu.memory_space<vmem>>, vector<15x32xf32>,
    %89 = vector.extract_strided_slice %70 {offsets = [18, 0], sizes = [14, 32], strides = [1, 1]} : vector<32x128xf32> to vector<14x32xf32>
    %c16_70 = arith.constant 16 : index
    %c128_71 = arith.constant 128 : index
    %90 = vector.load %arg5[%c16_70, %c128_71] : memref<32x160xf32, #tpu.memory_space<vmem>>, vector<14x32xf32>
    tpu.vector_store %arg5[%c16_70, %c128_71], %89 {strides = array<i32>} : memref<32x160xf32, #tpu.memory_space<vmem>>, vector<14x32xf32>,
    %c0_72 = arith.constant 0 : index
    %c0_73 = arith.constant 0 : index
    %91 = vector.load %arg5[%c0_72, %c0_73] : memref<32x160xf32, #tpu.memory_space<vmem>>, vector<32x160xf32>
    %92 = arith.truncf %91 : vector<32x160xf32> to vector<32x160xbf16>
    %c2_74 = arith.constant 2 : index
    %c0_75 = arith.constant 0 : index
    %c0_76 = arith.constant 0 : index
    %93 = vector.load %arg2[%c2_74, %c0_75, %c0_76] : memref<6x160x128xbf16, #tpu.memory_space<vmem>>, vector<1x160x128xbf16>
    %94 = vector.shape_cast %93 : vector<1x160x128xbf16> to vector<160x128xbf16>
    %cst_77 = arith.constant dense<0.000000e+00> : vector<32x128xf32>
    %95 = tpu.matmul %92, %94, %cst_77 {dimension_numbers = #tpu.dot_dimension_numbers<[1], [0], [0], [1], [0, 0, 1, 1], [], []>} : vector<32x160xbf16>, vector<160x128xbf16>, vector<32x128xf32> -> vector<32x128xf32>
    %c2_78 = arith.constant 2 : index
    %c0_79 = arith.constant 0 : index
    %c0_80 = arith.constant 0 : index
    %96 = vector.load %arg3[%c2_78, %c0_79, %c0_80] : memref<6x2x128xf32, #tpu.memory_space<vmem>>, vector<1x2x128xf32>
    %97 = vector.shape_cast %96 : vector<1x2x128xf32> to vector<2x128xf32>
    %98 = vector.extract_strided_slice %97 {offsets = [0, 0], sizes = [1, 128], strides = [1, 1]} : vector<2x128xf32> to vector<1x128xf32>
    %99 = vector.broadcast %98 : vector<1x128xf32> to vector<32x128xf32>
    %100 = arith.mulf %95, %99 : vector<32x128xf32>
    %101 = vector.extract_strided_slice %97 {offsets = [1, 0], sizes = [1, 128], strides = [1, 1]} : vector<2x128xf32> to vector<1x128xf32>
    %102 = vector.broadcast %101 : vector<1x128xf32> to vector<32x128xf32>
    %103 = arith.addf %100, %102 : vector<32x128xf32>
    %104 = math.tanh %103 : vector<32x128xf32>
    %105 = vector.extract_strided_slice %104 {offsets = [0, 0], sizes = [14, 32], strides = [1, 1]} : vector<32x128xf32> to vector<14x32xf32>
    %c2_81 = arith.constant 2 : index
    %c0_82 = arith.constant 0 : index
    %106 = vector.load %arg5[%c2_81, %c0_82] : memref<32x160xf32, #tpu.memory_space<vmem>>, vector<14x32xf32>
    tpu.vector_store %arg5[%c2_81, %c0_82], %105 {strides = array<i32>} : memref<32x160xf32, #tpu.memory_space<vmem>>, vector<14x32xf32>,
    %107 = vector.extract_strided_slice %104 {offsets = [0, 0], sizes = [15, 32], strides = [1, 1]} : vector<32x128xf32> to vector<15x32xf32>
    %c1_83 = arith.constant 1 : index
    %c32_84 = arith.constant 32 : index
    %108 = vector.load %arg5[%c1_83, %c32_84] : memref<32x160xf32, #tpu.memory_space<vmem>>, vector<15x32xf32>
    tpu.vector_store %arg5[%c1_83, %c32_84], %107 {strides = array<i32>} : memref<32x160xf32, #tpu.memory_space<vmem>>, vector<15x32xf32>,
    %109 = vector.extract_strided_slice %104 {offsets = [0, 0], sizes = [16, 32], strides = [1, 1]} : vector<32x128xf32> to vector<16x32xf32>
    %c0_85 = arith.constant 0 : index
    %c64_86 = arith.constant 64 : index
    %110 = vector.load %arg5[%c0_85, %c64_86] : memref<32x160xf32, #tpu.memory_space<vmem>>, vector<16x32xf32>
    tpu.vector_store %arg5[%c0_85, %c64_86], %109 {strides = array<i32>} : memref<32x160xf32, #tpu.memory_space<vmem>>, vector<16x32xf32>,
    %111 = vector.extract_strided_slice %104 {offsets = [1, 0], sizes = [15, 32], strides = [1, 1]} : vector<32x128xf32> to vector<15x32xf32>
    %c0_87 = arith.constant 0 : index
    %c96_88 = arith.constant 96 : index
    %112 = vector.load %arg5[%c0_87, %c96_88] : memref<32x160xf32, #tpu.memory_space<vmem>>, vector<15x32xf32>
    tpu.vector_store %arg5[%c0_87, %c96_88], %111 {strides = array<i32>} : memref<32x160xf32, #tpu.memory_space<vmem>>, vector<15x32xf32>,
    %113 = vector.extract_strided_slice %104 {offsets = [2, 0], sizes = [14, 32], strides = [1, 1]} : vector<32x128xf32> to vector<14x32xf32>
    %c0_89 = arith.constant 0 : index
    %c128_90 = arith.constant 128 : index
    %114 = vector.load %arg5[%c0_89, %c128_90] : memref<32x160xf32, #tpu.memory_space<vmem>>, vector<14x32xf32>
    tpu.vector_store %arg5[%c0_89, %c128_90], %113 {strides = array<i32>} : memref<32x160xf32, #tpu.memory_space<vmem>>, vector<14x32xf32>,
    %115 = vector.extract_strided_slice %104 {offsets = [16, 0], sizes = [14, 32], strides = [1, 1]} : vector<32x128xf32> to vector<14x32xf32>
    %c18_91 = arith.constant 18 : index
    %c0_92 = arith.constant 0 : index
    %116 = vector.load %arg5[%c18_91, %c0_92] : memref<32x160xf32, #tpu.memory_space<vmem>>, vector<14x32xf32>
    tpu.vector_store %arg5[%c18_91, %c0_92], %115 {strides = array<i32>} : memref<32x160xf32, #tpu.memory_space<vmem>>, vector<14x32xf32>,
    %117 = vector.extract_strided_slice %104 {offsets = [16, 0], sizes = [15, 32], strides = [1, 1]} : vector<32x128xf32> to vector<15x32xf32>
    %c17_93 = arith.constant 17 : index
    %c32_94 = arith.constant 32 : index
    %118 = vector.load %arg5[%c17_93, %c32_94] : memref<32x160xf32, #tpu.memory_space<vmem>>, vector<15x32xf32>
    tpu.vector_store %arg5[%c17_93, %c32_94], %117 {strides = array<i32>} : memref<32x160xf32, #tpu.memory_space<vmem>>, vector<15x32xf32>,
    %119 = vector.extract_strided_slice %104 {offsets = [16, 0], sizes = [16, 32], strides = [1, 1]} : vector<32x128xf32> to vector<16x32xf32>
    %c16_95 = arith.constant 16 : index
    %c64_96 = arith.constant 64 : index
    %120 = vector.load %arg5[%c16_95, %c64_96] : memref<32x160xf32, #tpu.memory_space<vmem>>, vector<16x32xf32>
    tpu.vector_store %arg5[%c16_95, %c64_96], %119 {strides = array<i32>} : memref<32x160xf32, #tpu.memory_space<vmem>>, vector<16x32xf32>,
    %121 = vector.extract_strided_slice %104 {offsets = [17, 0], sizes = [15, 32], strides = [1, 1]} : vector<32x128xf32> to vector<15x32xf32>
    %c16_97 = arith.constant 16 : index
    %c96_98 = arith.constant 96 : index
    %122 = vector.load %arg5[%c16_97, %c96_98] : memref<32x160xf32, #tpu.memory_space<vmem>>, vector<15x32xf32>
    tpu.vector_store %arg5[%c16_97, %c96_98], %121 {strides = array<i32>} : memref<32x160xf32, #tpu.memory_space<vmem>>, vector<15x32xf32>,
    %123 = vector.extract_strided_slice %104 {offsets = [18, 0], sizes = [14, 32], strides = [1, 1]} : vector<32x128xf32> to vector<14x32xf32>
    %c16_99 = arith.constant 16 : index
    %c128_100 = arith.constant 128 : index
    %124 = vector.load %arg5[%c16_99, %c128_100] : memref<32x160xf32, #tpu.memory_space<vmem>>, vector<14x32xf32>
    tpu.vector_store %arg5[%c16_99, %c128_100], %123 {strides = array<i32>} : memref<32x160xf32, #tpu.memory_space<vmem>>, vector<14x32xf32>,
    %c0_101 = arith.constant 0 : index
    %c0_102 = arith.constant 0 : index
    %125 = vector.load %arg5[%c0_101, %c0_102] : memref<32x160xf32, #tpu.memory_space<vmem>>, vector<32x160xf32>
    %126 = arith.truncf %125 : vector<32x160xf32> to vector<32x160xbf16>
    %c3 = arith.constant 3 : index
    %c0_103 = arith.constant 0 : index
    %c0_104 = arith.constant 0 : index
    %127 = vector.load %arg2[%c3, %c0_103, %c0_104] : memref<6x160x128xbf16, #tpu.memory_space<vmem>>, vector<1x160x128xbf16>
    %128 = vector.shape_cast %127 : vector<1x160x128xbf16> to vector<160x128xbf16>
    %cst_105 = arith.constant dense<0.000000e+00> : vector<32x128xf32>
    %129 = tpu.matmul %126, %128, %cst_105 {dimension_numbers = #tpu.dot_dimension_numbers<[1], [0], [0], [1], [0, 0, 1, 1], [], []>} : vector<32x160xbf16>, vector<160x128xbf16>, vector<32x128xf32> -> vector<32x128xf32>
    %c3_106 = arith.constant 3 : index
    %c0_107 = arith.constant 0 : index
    %c0_108 = arith.constant 0 : index
    %130 = vector.load %arg3[%c3_106, %c0_107, %c0_108] : memref<6x2x128xf32, #tpu.memory_space<vmem>>, vector<1x2x128xf32>
    %131 = vector.shape_cast %130 : vector<1x2x128xf32> to vector<2x128xf32>
    %132 = vector.extract_strided_slice %131 {offsets = [0, 0], sizes = [1, 128], strides = [1, 1]} : vector<2x128xf32> to vector<1x128xf32>
    %133 = vector.broadcast %132 : vector<1x128xf32> to vector<32x128xf32>
    %134 = arith.mulf %129, %133 : vector<32x128xf32>
    %135 = vector.extract_strided_slice %131 {offsets = [1, 0], sizes = [1, 128], strides = [1, 1]} : vector<2x128xf32> to vector<1x128xf32>
    %136 = vector.broadcast %135 : vector<1x128xf32> to vector<32x128xf32>
    %137 = arith.addf %134, %136 : vector<32x128xf32>
    %138 = math.tanh %137 : vector<32x128xf32>
    %139 = vector.extract_strided_slice %138 {offsets = [0, 0], sizes = [14, 32], strides = [1, 1]} : vector<32x128xf32> to vector<14x32xf32>
    %c2_109 = arith.constant 2 : index
    %c0_110 = arith.constant 0 : index
    %140 = vector.load %arg5[%c2_109, %c0_110] : memref<32x160xf32, #tpu.memory_space<vmem>>, vector<14x32xf32>
    tpu.vector_store %arg5[%c2_109, %c0_110], %139 {strides = array<i32>} : memref<32x160xf32, #tpu.memory_space<vmem>>, vector<14x32xf32>,
    %141 = vector.extract_strided_slice %138 {offsets = [0, 0], sizes = [15, 32], strides = [1, 1]} : vector<32x128xf32> to vector<15x32xf32>
    %c1_111 = arith.constant 1 : index
    %c32_112 = arith.constant 32 : index
    %142 = vector.load %arg5[%c1_111, %c32_112] : memref<32x160xf32, #tpu.memory_space<vmem>>, vector<15x32xf32>
    tpu.vector_store %arg5[%c1_111, %c32_112], %141 {strides = array<i32>} : memref<32x160xf32, #tpu.memory_space<vmem>>, vector<15x32xf32>,
    %143 = vector.extract_strided_slice %138 {offsets = [0, 0], sizes = [16, 32], strides = [1, 1]} : vector<32x128xf32> to vector<16x32xf32>
    %c0_113 = arith.constant 0 : index
    %c64_114 = arith.constant 64 : index
    %144 = vector.load %arg5[%c0_113, %c64_114] : memref<32x160xf32, #tpu.memory_space<vmem>>, vector<16x32xf32>
    tpu.vector_store %arg5[%c0_113, %c64_114], %143 {strides = array<i32>} : memref<32x160xf32, #tpu.memory_space<vmem>>, vector<16x32xf32>,
    %145 = vector.extract_strided_slice %138 {offsets = [1, 0], sizes = [15, 32], strides = [1, 1]} : vector<32x128xf32> to vector<15x32xf32>
    %c0_115 = arith.constant 0 : index
    %c96_116 = arith.constant 96 : index
    %146 = vector.load %arg5[%c0_115, %c96_116] : memref<32x160xf32, #tpu.memory_space<vmem>>, vector<15x32xf32>
    tpu.vector_store %arg5[%c0_115, %c96_116], %145 {strides = array<i32>} : memref<32x160xf32, #tpu.memory_space<vmem>>, vector<15x32xf32>,
    %147 = vector.extract_strided_slice %138 {offsets = [2, 0], sizes = [14, 32], strides = [1, 1]} : vector<32x128xf32> to vector<14x32xf32>
    %c0_117 = arith.constant 0 : index
    %c128_118 = arith.constant 128 : index
    %148 = vector.load %arg5[%c0_117, %c128_118] : memref<32x160xf32, #tpu.memory_space<vmem>>, vector<14x32xf32>
    tpu.vector_store %arg5[%c0_117, %c128_118], %147 {strides = array<i32>} : memref<32x160xf32, #tpu.memory_space<vmem>>, vector<14x32xf32>,
    %149 = vector.extract_strided_slice %138 {offsets = [16, 0], sizes = [14, 32], strides = [1, 1]} : vector<32x128xf32> to vector<14x32xf32>
    %c18_119 = arith.constant 18 : index
    %c0_120 = arith.constant 0 : index
    %150 = vector.load %arg5[%c18_119, %c0_120] : memref<32x160xf32, #tpu.memory_space<vmem>>, vector<14x32xf32>
    tpu.vector_store %arg5[%c18_119, %c0_120], %149 {strides = array<i32>} : memref<32x160xf32, #tpu.memory_space<vmem>>, vector<14x32xf32>,
    %151 = vector.extract_strided_slice %138 {offsets = [16, 0], sizes = [15, 32], strides = [1, 1]} : vector<32x128xf32> to vector<15x32xf32>
    %c17_121 = arith.constant 17 : index
    %c32_122 = arith.constant 32 : index
    %152 = vector.load %arg5[%c17_121, %c32_122] : memref<32x160xf32, #tpu.memory_space<vmem>>, vector<15x32xf32>
    tpu.vector_store %arg5[%c17_121, %c32_122], %151 {strides = array<i32>} : memref<32x160xf32, #tpu.memory_space<vmem>>, vector<15x32xf32>,
    %153 = vector.extract_strided_slice %138 {offsets = [16, 0], sizes = [16, 32], strides = [1, 1]} : vector<32x128xf32> to vector<16x32xf32>
    %c16_123 = arith.constant 16 : index
    %c64_124 = arith.constant 64 : index
    %154 = vector.load %arg5[%c16_123, %c64_124] : memref<32x160xf32, #tpu.memory_space<vmem>>, vector<16x32xf32>
    tpu.vector_store %arg5[%c16_123, %c64_124], %153 {strides = array<i32>} : memref<32x160xf32, #tpu.memory_space<vmem>>, vector<16x32xf32>,
    %155 = vector.extract_strided_slice %138 {offsets = [17, 0], sizes = [15, 32], strides = [1, 1]} : vector<32x128xf32> to vector<15x32xf32>
    %c16_125 = arith.constant 16 : index
    %c96_126 = arith.constant 96 : index
    %156 = vector.load %arg5[%c16_125, %c96_126] : memref<32x160xf32, #tpu.memory_space<vmem>>, vector<15x32xf32>
    tpu.vector_store %arg5[%c16_125, %c96_126], %155 {strides = array<i32>} : memref<32x160xf32, #tpu.memory_space<vmem>>, vector<15x32xf32>,
    %157 = vector.extract_strided_slice %138 {offsets = [18, 0], sizes = [14, 32], strides = [1, 1]} : vector<32x128xf32> to vector<14x32xf32>
    %c16_127 = arith.constant 16 : index
    %c128_128 = arith.constant 128 : index
    %158 = vector.load %arg5[%c16_127, %c128_128] : memref<32x160xf32, #tpu.memory_space<vmem>>, vector<14x32xf32>
    tpu.vector_store %arg5[%c16_127, %c128_128], %157 {strides = array<i32>} : memref<32x160xf32, #tpu.memory_space<vmem>>, vector<14x32xf32>,
    %c0_129 = arith.constant 0 : index
    %c0_130 = arith.constant 0 : index
    %159 = vector.load %arg5[%c0_129, %c0_130] : memref<32x160xf32, #tpu.memory_space<vmem>>, vector<32x160xf32>
    %160 = arith.truncf %159 : vector<32x160xf32> to vector<32x160xbf16>
    %c4 = arith.constant 4 : index
    %c0_131 = arith.constant 0 : index
    %c0_132 = arith.constant 0 : index
    %161 = vector.load %arg2[%c4, %c0_131, %c0_132] : memref<6x160x128xbf16, #tpu.memory_space<vmem>>, vector<1x160x128xbf16>
    %162 = vector.shape_cast %161 : vector<1x160x128xbf16> to vector<160x128xbf16>
    %cst_133 = arith.constant dense<0.000000e+00> : vector<32x128xf32>
    %163 = tpu.matmul %160, %162, %cst_133 {dimension_numbers = #tpu.dot_dimension_numbers<[1], [0], [0], [1], [0, 0, 1, 1], [], []>} : vector<32x160xbf16>, vector<160x128xbf16>, vector<32x128xf32> -> vector<32x128xf32>
    %c4_134 = arith.constant 4 : index
    %c0_135 = arith.constant 0 : index
    %c0_136 = arith.constant 0 : index
    %164 = vector.load %arg3[%c4_134, %c0_135, %c0_136] : memref<6x2x128xf32, #tpu.memory_space<vmem>>, vector<1x2x128xf32>
    %165 = vector.shape_cast %164 : vector<1x2x128xf32> to vector<2x128xf32>
    %166 = vector.extract_strided_slice %165 {offsets = [0, 0], sizes = [1, 128], strides = [1, 1]} : vector<2x128xf32> to vector<1x128xf32>
    %167 = vector.broadcast %166 : vector<1x128xf32> to vector<32x128xf32>
    %168 = arith.mulf %163, %167 : vector<32x128xf32>
    %169 = vector.extract_strided_slice %165 {offsets = [1, 0], sizes = [1, 128], strides = [1, 1]} : vector<2x128xf32> to vector<1x128xf32>
    %170 = vector.broadcast %169 : vector<1x128xf32> to vector<32x128xf32>
    %171 = arith.addf %168, %170 : vector<32x128xf32>
    %172 = math.tanh %171 : vector<32x128xf32>
    %173 = vector.extract_strided_slice %172 {offsets = [0, 0], sizes = [14, 32], strides = [1, 1]} : vector<32x128xf32> to vector<14x32xf32>
    %c2_137 = arith.constant 2 : index
    %c0_138 = arith.constant 0 : index
    %174 = vector.load %arg5[%c2_137, %c0_138] : memref<32x160xf32, #tpu.memory_space<vmem>>, vector<14x32xf32>
    tpu.vector_store %arg5[%c2_137, %c0_138], %173 {strides = array<i32>} : memref<32x160xf32, #tpu.memory_space<vmem>>, vector<14x32xf32>,
    %175 = vector.extract_strided_slice %172 {offsets = [0, 0], sizes = [15, 32], strides = [1, 1]} : vector<32x128xf32> to vector<15x32xf32>
    %c1_139 = arith.constant 1 : index
    %c32_140 = arith.constant 32 : index
    %176 = vector.load %arg5[%c1_139, %c32_140] : memref<32x160xf32, #tpu.memory_space<vmem>>, vector<15x32xf32>
    tpu.vector_store %arg5[%c1_139, %c32_140], %175 {strides = array<i32>} : memref<32x160xf32, #tpu.memory_space<vmem>>, vector<15x32xf32>,
    %177 = vector.extract_strided_slice %172 {offsets = [0, 0], sizes = [16, 32], strides = [1, 1]} : vector<32x128xf32> to vector<16x32xf32>
    %c0_141 = arith.constant 0 : index
    %c64_142 = arith.constant 64 : index
    %178 = vector.load %arg5[%c0_141, %c64_142] : memref<32x160xf32, #tpu.memory_space<vmem>>, vector<16x32xf32>
    tpu.vector_store %arg5[%c0_141, %c64_142], %177 {strides = array<i32>} : memref<32x160xf32, #tpu.memory_space<vmem>>, vector<16x32xf32>,
    %179 = vector.extract_strided_slice %172 {offsets = [1, 0], sizes = [15, 32], strides = [1, 1]} : vector<32x128xf32> to vector<15x32xf32>
    %c0_143 = arith.constant 0 : index
    %c96_144 = arith.constant 96 : index
    %180 = vector.load %arg5[%c0_143, %c96_144] : memref<32x160xf32, #tpu.memory_space<vmem>>, vector<15x32xf32>
    tpu.vector_store %arg5[%c0_143, %c96_144], %179 {strides = array<i32>} : memref<32x160xf32, #tpu.memory_space<vmem>>, vector<15x32xf32>,
    %181 = vector.extract_strided_slice %172 {offsets = [2, 0], sizes = [14, 32], strides = [1, 1]} : vector<32x128xf32> to vector<14x32xf32>
    %c0_145 = arith.constant 0 : index
    %c128_146 = arith.constant 128 : index
    %182 = vector.load %arg5[%c0_145, %c128_146] : memref<32x160xf32, #tpu.memory_space<vmem>>, vector<14x32xf32>
    tpu.vector_store %arg5[%c0_145, %c128_146], %181 {strides = array<i32>} : memref<32x160xf32, #tpu.memory_space<vmem>>, vector<14x32xf32>,
    %183 = vector.extract_strided_slice %172 {offsets = [16, 0], sizes = [14, 32], strides = [1, 1]} : vector<32x128xf32> to vector<14x32xf32>
    %c18_147 = arith.constant 18 : index
    %c0_148 = arith.constant 0 : index
    %184 = vector.load %arg5[%c18_147, %c0_148] : memref<32x160xf32, #tpu.memory_space<vmem>>, vector<14x32xf32>
    tpu.vector_store %arg5[%c18_147, %c0_148], %183 {strides = array<i32>} : memref<32x160xf32, #tpu.memory_space<vmem>>, vector<14x32xf32>,
    %185 = vector.extract_strided_slice %172 {offsets = [16, 0], sizes = [15, 32], strides = [1, 1]} : vector<32x128xf32> to vector<15x32xf32>
    %c17_149 = arith.constant 17 : index
    %c32_150 = arith.constant 32 : index
    %186 = vector.load %arg5[%c17_149, %c32_150] : memref<32x160xf32, #tpu.memory_space<vmem>>, vector<15x32xf32>
    tpu.vector_store %arg5[%c17_149, %c32_150], %185 {strides = array<i32>} : memref<32x160xf32, #tpu.memory_space<vmem>>, vector<15x32xf32>,
    %187 = vector.extract_strided_slice %172 {offsets = [16, 0], sizes = [16, 32], strides = [1, 1]} : vector<32x128xf32> to vector<16x32xf32>
    %c16_151 = arith.constant 16 : index
    %c64_152 = arith.constant 64 : index
    %188 = vector.load %arg5[%c16_151, %c64_152] : memref<32x160xf32, #tpu.memory_space<vmem>>, vector<16x32xf32>
    tpu.vector_store %arg5[%c16_151, %c64_152], %187 {strides = array<i32>} : memref<32x160xf32, #tpu.memory_space<vmem>>, vector<16x32xf32>,
    %189 = vector.extract_strided_slice %172 {offsets = [17, 0], sizes = [15, 32], strides = [1, 1]} : vector<32x128xf32> to vector<15x32xf32>
    %c16_153 = arith.constant 16 : index
    %c96_154 = arith.constant 96 : index
    %190 = vector.load %arg5[%c16_153, %c96_154] : memref<32x160xf32, #tpu.memory_space<vmem>>, vector<15x32xf32>
    tpu.vector_store %arg5[%c16_153, %c96_154], %189 {strides = array<i32>} : memref<32x160xf32, #tpu.memory_space<vmem>>, vector<15x32xf32>,
    %191 = vector.extract_strided_slice %172 {offsets = [18, 0], sizes = [14, 32], strides = [1, 1]} : vector<32x128xf32> to vector<14x32xf32>
    %c16_155 = arith.constant 16 : index
    %c128_156 = arith.constant 128 : index
    %192 = vector.load %arg5[%c16_155, %c128_156] : memref<32x160xf32, #tpu.memory_space<vmem>>, vector<14x32xf32>
    tpu.vector_store %arg5[%c16_155, %c128_156], %191 {strides = array<i32>} : memref<32x160xf32, #tpu.memory_space<vmem>>, vector<14x32xf32>,
    %c0_157 = arith.constant 0 : index
    %c0_158 = arith.constant 0 : index
    %193 = vector.load %arg5[%c0_157, %c0_158] : memref<32x160xf32, #tpu.memory_space<vmem>>, vector<32x160xf32>
    %194 = arith.truncf %193 : vector<32x160xf32> to vector<32x160xbf16>
    %c5 = arith.constant 5 : index
    %c0_159 = arith.constant 0 : index
    %c0_160 = arith.constant 0 : index
    %195 = vector.load %arg2[%c5, %c0_159, %c0_160] : memref<6x160x128xbf16, #tpu.memory_space<vmem>>, vector<1x160x128xbf16>
    %196 = vector.shape_cast %195 : vector<1x160x128xbf16> to vector<160x128xbf16>
    %cst_161 = arith.constant dense<0.000000e+00> : vector<32x128xf32>
    %197 = tpu.matmul %194, %196, %cst_161 {dimension_numbers = #tpu.dot_dimension_numbers<[1], [0], [0], [1], [0, 0, 1, 1], [], []>} : vector<32x160xbf16>, vector<160x128xbf16>, vector<32x128xf32> -> vector<32x128xf32>
    %c5_162 = arith.constant 5 : index
    %c0_163 = arith.constant 0 : index
    %c0_164 = arith.constant 0 : index
    %198 = vector.load %arg3[%c5_162, %c0_163, %c0_164] : memref<6x2x128xf32, #tpu.memory_space<vmem>>, vector<1x2x128xf32>
    %199 = vector.shape_cast %198 : vector<1x2x128xf32> to vector<2x128xf32>
    %200 = vector.extract_strided_slice %199 {offsets = [0, 0], sizes = [1, 128], strides = [1, 1]} : vector<2x128xf32> to vector<1x128xf32>
    %201 = vector.broadcast %200 : vector<1x128xf32> to vector<32x128xf32>
    %202 = arith.mulf %197, %201 : vector<32x128xf32>
    %203 = vector.extract_strided_slice %199 {offsets = [1, 0], sizes = [1, 128], strides = [1, 1]} : vector<2x128xf32> to vector<1x128xf32>
    %204 = vector.broadcast %203 : vector<1x128xf32> to vector<32x128xf32>
    %205 = arith.addf %202, %204 : vector<32x128xf32>
    %c0_165 = arith.constant 0 : index
    %c0_166 = arith.constant 0 : index
    %206 = vector.load %arg4[%c0_165, %c0_166] : memref<32x128xf32, #tpu.memory_space<vmem>>, vector<32x128xf32>
    tpu.vector_store %arg4[%c0_165, %c0_166], %205 {strides = array<i32>} : memref<32x128xf32, #tpu.memory_space<vmem>>, vector<32x128xf32>,
    return
  }
  func.func @transform_0(%arg0: i32) -> (i32, i32) {
    %c0_i32 = arith.constant 0 : i32
    %c0_i32_0 = arith.constant 0 : i32
    %c0_i32_1 = arith.constant 0 : i32
    return %c0_i32, %c0_i32_0 : i32, i32
  }
  func.func @transform_1(%arg0: i32) -> (i32, i32, i32) {
    %c0_i32 = arith.constant 0 : i32
    %c0_i32_0 = arith.constant 0 : i32
    %c0_i32_1 = arith.constant 0 : i32
    %c0_i32_2 = arith.constant 0 : i32
    return %c0_i32, %c0_i32_0, %c0_i32_1 : i32, i32, i32
  }
  func.func @transform_2(%arg0: i32) -> (i32, i32, i32) {
    %c0_i32 = arith.constant 0 : i32
    %c0_i32_0 = arith.constant 0 : i32
    %c0_i32_1 = arith.constant 0 : i32
    %c0_i32_2 = arith.constant 0 : i32
    return %c0_i32, %c0_i32_0, %c0_i32_1 : i32, i32, i32
  }
  func.func @transform_3(%arg0: i32) -> (i32, i32) {
    %c0_i32 = arith.constant 0 : i32
    %c0_i32_0 = arith.constant 0 : i32
    %c0_i32_1 = arith.constant 0 : i32
    return %c0_i32, %c0_i32_0 : i32, i32
  }
}

</mosaic_0001>

<bundles_post_ra>
// kernel: postnet_forward.1
= control target key start
LH: loop header
LB: loop body
LE: loop exit
PB: predicated region body
PF: predicated region fallthrough
CT: control target
= control target key end

     0   :  { %8 = vsyncpa [#allocation4], 0  ;;  %s1836_s12 = smov [#allocation3]   ;;  %s2251_s0 = inlined_call_operand.vmem [shape: f32[32,32], index: 0, kind: input, shape index: {}]   ;;  %s2252_s1 = inlined_call_operand.hbm [shape: bf16[6,160,128], index: 1, kind: input, shape index: {}]   ;;  %s2253_s2 = inlined_call_operand.vmem [shape: f32[6,2,128], index: 2, kind: input, shape index: {}]   ;;  %s2254_s3 = inlined_call_operand.vmem [shape: f32[32,128], index: 3, kind: output, shape index: {}]  }
   0x1   :  { %s16_s13 = sshll.u32 %s1836_s12, 4  ;;  %s1812_s16 = scalar_lea.hbm %s2252_s1, 7680  ;;  %s17_s13 = int_to_ptr.vmem [resolvable:$true] %s16_s13 }
   0x2   :  { %p1813_p0 = scmp.ne.s32.totalorder %s2252_s1, %s1812_s16  ;;  %p1816_p1 = scmp.lt.u32.totalorder %s1812_s16, %s2252_s1 }
   0x4   :  { %p1818_p2 = pnand %p1816_p1, %p1813_p0 }
   0x6   :  { %1821 = shalt.err (!%p1818_p2)
}
   0x7   :  { %s1822_s21 = scalar_lea.vmem %s17_s13, 7680  ;;  %p1827_p4 = scmp.lt.s32.totalorder %s17_s13, %s17_s13 }
   0x8   :  { %p1823_p3 = scmp.ne.s32.totalorder %s17_s13, %s1822_s21  ;;  %p1828_p5 = scmp.lt.s32.totalorder %s1822_s21, %s1822_s21 }
   0xa   :  { %p1829_p6 = por %p1828_p5, %p1827_p4 }
   0xc   :  { %p1830_p7 = pnand %p1829_p6, %p1823_p3 }
   0xe   :  { %1833 = shalt.err (!%p1830_p7)
}
   0xf   :  { %s1837_s22 = smov 64   ;;  %s1838_s23 = smov 4  }
  0x10   :  { %22 = dma.hbm_to_vmem [thread:$0]  %s2252_s1, 7680, %s17_s13, [#allocation4], %s1837_s22, %s1837_s22, %s1838_s23  }
  0x11   :  { %1834 = dma.done.wait [#allocation4], 7680  }
  0x12   :  { %1835 = vsyncadd [#allocation4], 4294959616  ;;  %vm30_vm0 = vcmask 261120   ;;  %v1839_v0 = vmov 0.0   ;;  %v1840_v1 = vmov 0   ;;  %vm90_vm1 = vcmask 1045504  }
  0x13   :  { %31 = vst.msk [vmem:[#allocation2 + $0x8] sm:$0xff] %vm30_vm0, %v1839_v0  ;;  %33 = vst.msk [vmem:[#allocation2 + $0x18] sm:$0xff] %vm30_vm0, %v1839_v0  ;;  %243 = vmatprep.subr.bf16.mxu0 %v1840_v1  ;;  %504 = vmatprep.subr.bf16.mxu1 %v1840_v1  ;;  %v38_v2 = vld [vmem:[%s2251_s0] sm:$0xff]  ;;  %v39_v3 = vld [vmem:[%s2251_s0 + $0x8] sm:$0xff]  ;;  %vm97_vm2 = vcmask 259072   ;;  %vm53_vm3 = vcmask 1040384  }
  0x14   :  { %29 = vst [vmem:[#allocation2] sm:$0xff] %v1839_v0  ;;  %32 = vst [vmem:[#allocation2 + $0x10] sm:$0xff] %v1839_v0  ;;  %vm50_vm4 = vcmask 261122   ;;  %vm44_vm5 = vcmask 1041408   ;;  %67 = vrot.lane.b32.xlu1 %v38_v2, %s1837_s22  ;;  %v45_v4 = vrot.slane %v38_v2, 6  ;;  %v91_v5 = vrot.slane %v38_v2, 2 }
  0x15   :  { %34 = vst [vmem:[#allocation2 + $0x20] sm:$0xff] %v1839_v0  ;;  %35 = vst.msk [vmem:[#allocation2 + $0x28] sm:$0xff] %vm30_vm0, %v1839_v0  ;;  %v54_v6 = vrot.slane %v38_v2, 7  ;;  %v46_v7 = vrot.slane %v39_v3, 6  ;;  %v1712_v8 = vld [vmem:[#allocation3] sm:$0xff]   ;;  %v92_v9 = vrot.slane %v39_v3, 2 }
  0x16   :  { %36 = vst [vmem:[#allocation2 + $0x30] sm:$0xff] %v1839_v0  ;;  %37 = vst.msk [vmem:[#allocation2 + $0x38] sm:$0xff] %vm30_vm0, %v1839_v0  ;;  %v55_v10 = vrot.slane %v39_v3, 7  ;;  %v40_v11 = vld [vmem:[%s2251_s0 + $0x10] sm:$0xff]  ;;  %v41_v12 = vld [vmem:[%s2251_s0 + $0x18] sm:$0xff]  ;;  %s1841_s6 = smov 32   ;;  %244 = vmatpush1.bf16.msra.mxu0 %v1712_v8 }
  0x17   :  { %57 = vrot.lane.b32.xlu0 %v54_v6, %s1841_s6  ;;  %v78_v13 = vrot.slane %v39_v3, 1  ;;  %v138_v14 = vrot.slane %v40_v11, 2  ;;  %v139_v15 = vrot.slane %v41_v12, 2  ;;  %51 = vst.msk [vmem:[#allocation2] sm:$0xfc] %vm50_vm4, %v45_v4  ;;  %v93_v16 = vsel %vm90_vm1, %v91_v5, %v92_v9  ;;  %245 = vmatprep.subr.bf16.mxu0 %v1840_v1  ;;  %v1713_v19 = vld [vmem:[#allocation3 + $0x8] sm:$0xff]  }
  0x18   :  { %98 = vst.msk [vmem:[#allocation2 + $0x18] sm:$0x3f] %vm97_vm2, %v92_v9  ;;  %v56_v17 = vsel %vm53_vm3, %v54_v6, %v55_v10  ;;  %v77_v18 = vrot.slane %v38_v2, 1  ;;  %69 = vrot.lane.b32.xlu1 %v39_v3, %s1837_s22  ;;  %vm76_vm6 = vcmask 1046528   ;;  %v108_v20 = vrot.slane %v40_v11, 7  ;;  %v1714_v25 = vld [vmem:[#allocation3 + $0x10] sm:$0xff]  }
  0x19   :  { %96 = vst.msk [vmem:[#allocation2 + $0x8] sm:$0xff] %vm30_vm0, %v93_v16  ;;  %v140_v21 = vsel %vm90_vm1, %v138_v14, %v139_v15  ;;  %v47_v22 = vsel %vm44_vm5, %v45_v4, %v46_v7  ;;  %v109_v23 = vrot.slane %v41_v12, 7  ;;  %v101_v24 = vrot.slane %v40_v11, 6  ;;  %s1842_s0 = smov 96   ;;  %v1715_v30 = vld [vmem:[#allocation3 + $0x18] sm:$0xff]   ;;  %v1716_v35 = vld [vmem:[#allocation3 + $0x20] sm:$0xff]  }
  0x1a   :  { %144 = vst.msk [vmem:[#allocation2 + $0x38] sm:$0x3f] %vm97_vm2, %v139_v15  ;;  %246 = vmatpush1.bf16.msra.mxu0 %v1713_v19  ;;  %v102_v26 = vrot.slane %v41_v12, 6  ;;  %v79_v27 = vsel %vm76_vm6, %v77_v18, %v78_v13  ;;  %v128_v31 = vrot.slane %v41_v12, 1  ;;  %v127_v34 = vrot.slane %v40_v11, 1  ;;  %v1717_v37 = vld [vmem:[#allocation3 + $0x28] sm:$0xff]  }
  0x1b   :  { %143 = vst.msk [vmem:[#allocation2 + $0x28] sm:$0xff] %vm30_vm0, %v140_v21  ;;  %52 = vst.msk [vmem:[#allocation2 + $0x10] sm:$0xff] %vm30_vm0, %v47_v22  ;;  %59 = vrot.lane.b32.xlu0 %v56_v17, %s1841_s6  ;;  %247 = vmatprep.subr.bf16.mxu0 %v1840_v1  ;;  %v110_v29 = vsel %vm53_vm3, %v108_v20, %v109_v23  ;;  %v1718_v39 = vld [vmem:[#allocation3 + $0x30] sm:$0xff]   ;;  %v1719_v40 = vld [vmem:[#allocation3 + $0x38] sm:$0xff]   ;;  %vm63_vm7 = vcmask 523521   ;;  %vm73_vm8 = vcmask 785920   ;;  %v293_v6 = vlaneseq }
  0x1c   :  { %106 = vst.msk [vmem:[#allocation2 + $0x20] sm:$0xfc] %vm50_vm4, %v101_v24  ;;  %82 = vrot.lane.b32.xlu1 %v78_v13, %s1842_s0  ;;  %v103_v28 = vsel %vm44_vm5, %v101_v24, %v102_v26  ;;  %v129_v38 = vsel %vm76_vm6, %v127_v34, %v128_v31  ;;  %v1720_v41 = vld [vmem:[#allocation3 + $0x40] sm:$0xff]   ;;  %v1721_v42 = vld [vmem:[#allocation3 + $0x48] sm:$0xff]   ;;  %vm65_vm9 = vcmask 523520   ;;  %vm88_vm10 = vcmask 1047296  }
  0x1d   :  { %107 = vst.msk [vmem:[#allocation2 + $0x30] sm:$0xff] %vm30_vm0, %v103_v28  ;;  %vm86_vm11 = vcmask 1048320   ;;  %v1722_v0 = vld [vmem:[#allocation3 + $0x50] sm:$0xff]   ;;  %v1723_v2 = vld [vmem:[#allocation3 + $0x58] sm:$0xff]   ;;  %v1724_v3 = vld [vmem:[#allocation3 + $0x60] sm:$0xff]   ;;  %v294_v7 = vshrl.u32 %v293_v6, 7 }
  0x1e   :  { %248 = vmatpush1.bf16.msra.mxu0 %v1714_v25  ;;  %505 = vmatpush1.bf16.msra.mxu1 %v1722_v0  ;;  %v1725_v4 = vld [vmem:[#allocation3 + $0x68] sm:$0xff]   ;;  %v1726_v5 = vld [vmem:[#allocation3 + $0x70] sm:$0xff]   ;;  %v292_v9 = vld [vmem:[%s2253_s2] sm:$0x3] }
  0x1f   :  { %80 = vrot.lane.b32.xlu0 %v79_v27, %s1842_s0  ;;  %249 = vmatprep.subr.bf16.mxu0 %v1840_v1  ;;  %v148_v33 = vld [vmem:[#allocation2 + $0x18] sm:$0xff]  ;;  %v1952_v8 = vsub.s32 0, %v294_v7  ;;  %v1957_v10 = vsub.s32 1, %v294_v7  ;;  %v1728_v22 = vld [vmem:[#allocation3 + $0x80] sm:$0xff]   ;;  %v1729_v24 = vld [vmem:[#allocation3 + $0x88] sm:$0xff]  }
  0x20   :  { %113 = vrot.lane.b32.xlu1 %v110_v29, %s1841_s6  ;;  %v146_v32 = vld [vmem:[#allocation2 + $0x8] sm:$0xff]  ;;  %506 = vmatprep.subr.bf16.mxu1 %v1840_v1  ;;  %v1730_v34 = vld [vmem:[#allocation3 + $0x90] sm:$0xff]  }
  0x21   :  { %v154_v36 = vpack.c.bf16 %v148_v33, %v146_v32  ;;  %v152_v52 = vld [vmem:[#allocation2 + $0x38] sm:$0xff] }
  0x22   :  { %250 = vmatpush1.bf16.msra.mxu0 %v1715_v30  ;;  %v150_v51 = vld [vmem:[#allocation2 + $0x28] sm:$0xff]  ;;  %507 = vmatpush1.bf16.msra.mxu1 %v1723_v2 }
  0x23   :  { %111 = vrot.lane.b32.xlu0 %v108_v20, %s1841_s6  ;;  %251 = vmatprep.subr.bf16.mxu0 %v1840_v1  ;;  %v156_v57 = vpack.c.bf16 %v152_v52, %v150_v51  ;;  %v1727_v20 = vld [vmem:[#allocation3 + $0x78] sm:$0xff]  }
  0x24   :  { %1638 = vmatprep.mubr.msk.bf16.mxu0 %vm30_vm0, %v154_v36  ;;  %121 = vrot.lane.b32.xlu1 %v41_v12, %s1837_s22  ;;  %v304_v12 = vrot.slane %v292_v9, %v1957_v10 }
  0x25   :  { %508 = vmatprep.subr.bf16.mxu1 %v1840_v1 }
  0x26   :  { %252 = vmatpush1.bf16.msra.mxu0 %v1716_v35  ;;  %509 = vmatpush1.bf16.msra.mxu1 %v1724_v3 }
  0x27   :  { %119 = vrot.lane.b32.xlu0 %v40_v11, %s1837_s22  ;;  %253 = vmatprep.subr.bf16.mxu0 %v1840_v1  ;;  %v296_v11 = vrot.slane %v292_v9, %v1952_v8 }
  0x28   :  { %132 = vrot.lane.b32.xlu1 %v128_v31, %s1842_s0  ;;  %510 = vmatprep.subr.bf16.mxu1 %v1840_v1 }
  0x2a   :  { %254 = vmatpush1.bf16.msra.mxu0 %v1717_v37  ;;  %511 = vmatpush1.bf16.msra.mxu1 %v1725_v4 }
  0x2b   :  { %130 = vrot.lane.b32.xlu0 %v129_v38, %s1842_s0  ;;  %255 = vmatprep.subr.bf16.mxu0 %v1840_v1 }
  0x2c   :  { %512 = vmatprep.subr.bf16.mxu1 %v1840_v1 }
  0x2e   :  { %256 = vmatpush1.bf16.msra.mxu0 %v1718_v39  ;;  %513 = vmatpush1.bf16.msra.mxu1 %v1726_v5 }
  0x2f   :  { %257 = vmatprep.subr.bf16.mxu0 %v1840_v1  ;;  %514 = vmatprep.subr.bf16.mxu1 %v1840_v1 }
  0x32   :  { %258 = vmatpush1.bf16.msra.mxu0 %v1719_v40  ;;  %515 = vmatpush1.bf16.msra.mxu1 %v1727_v20 }
  0x33   :  { %259 = vmatprep.subr.bf16.mxu0 %v1840_v1  ;;  %516 = vmatprep.subr.bf16.mxu1 %v1840_v1 }
  0x36   :  { %260 = vmatpush1.bf16.msra.mxu0 %v1720_v41  ;;  %517 = vmatpush1.bf16.msra.mxu1 %v1728_v22 }
  0x37   :  { %261 = vmatprep.subr.bf16.mxu0 %v1840_v1  ;;  %518 = vmatprep.subr.bf16.mxu1 %v1840_v1 }
  0x3a   :  { %262 = vmatpush1.bf16.msra.mxu0 %v1721_v42  ;;  %519 = vmatpush1.bf16.msra.mxu1 %v1729_v24 }
  0x3b   :  { %766 = vmatprep.subr.bf16.mxu0 %v1840_v1  ;;  %520 = vmatprep.subr.bf16.mxu1 %v1840_v1 }
  0x3e   :  { %521 = vmatpush1.bf16.msra.mxu1 %v1730_v34 }
  0x3f   :  { %522 = vmatprep.subr.bf16.mxu1 %v1840_v1 }
  0x86   :  { %v68_v43 = vpop.permute.xlu1 %67 }
  0x89   :  { %v58_v44 = vpop.permute.xlu0 %57 }
  0x8a   :  { %64 = vst.msk [vmem:[#allocation2] sm:$0xfe] %vm63_vm7, %v58_v44  ;;  %v70_v45 = vpop.permute.xlu1 %69 }
  0x8b   :  { %74 = vst.msk [vmem:[#allocation2] sm:$0xff] %vm73_vm8, %v68_v43 }
  0x8d   :  { %v60_v46 = vpop.permute.xlu0 %59 }
  0x8e   :  { %66 = vst.msk [vmem:[#allocation2 + $0x10] sm:$0xff] %vm65_vm9, %v60_v46  ;;  %v83_v47 = vpop.permute.xlu1 %82 }
  0x8f   :  { %75 = vst.msk [vmem:[#allocation2 + $0x10] sm:$0xff] %vm73_vm8, %v70_v45 }
  0x90   :  { %89 = vst.msk [vmem:[#allocation2 + $0x10] sm:$0x7f] %vm88_vm10, %v83_v47  ;;  %v1731_v47 = vld [vmem:[#allocation3 + $0x98] sm:$0xff]  }
  0x91   :  { %v81_v48 = vpop.permute.xlu0 %80  ;;  %523 = vmatpush1.bf16.msra.mxu1 %v1731_v47  ;;  %v1739_v47 = vld [vmem:[#allocation3 + $0xd8] sm:$0xff]  }
  0x92   :  { %87 = vst.msk [vmem:[#allocation2] sm:$0xff] %vm86_vm11, %v81_v48  ;;  %v114_v49 = vpop.permute.xlu1 %113  ;;  %1028 = vmatprep.subr.bf16.mxu1 %v1840_v1 }
  0x93   :  { %118 = vst.msk [vmem:[#allocation2 + $0x30] sm:$0xff] %vm65_vm9, %v114_v49 }
  0x95   :  { %v112_v50 = vpop.permute.xlu0 %111 }
  0x96   :  { %117 = vst.msk [vmem:[#allocation2 + $0x20] sm:$0xfe] %vm63_vm7, %v112_v50  ;;  %v122_v53 = vpop.permute.xlu1 %121 }
  0x97   :  { %126 = vst.msk [vmem:[#allocation2 + $0x30] sm:$0xff] %vm73_vm8, %v122_v53  ;;  %v147_v56 = vld [vmem:[#allocation2 + $0x10] sm:$0xff] }
  0x99   :  { %v120_v54 = vpop.permute.xlu0 %119  ;;  %v145_v55 = vld [vmem:[#allocation2] sm:$0xff] }
  0x9a   :  { %125 = vst.msk [vmem:[#allocation2 + $0x20] sm:$0xff] %vm73_vm8, %v120_v54  ;;  %v153_v58 = vpack.c.bf16 %v147_v56, %v145_v55  ;;  %v133_v59 = vpop.permute.xlu1 %132 }
  0x9b   :  { %137 = vst.msk [vmem:[#allocation2 + $0x30] sm:$0x7f] %vm88_vm10, %v133_v59 }
  0x9c   :  { %276 = vmatmul.mubr.bf16.vlgmr.msra.gmra.mrb[0].mxu0 %v153_v58 }
  0x9d   :  { %v131_v60 = vpop.permute.xlu0 %130  ;;  %1639 = vmatprep.mubr.msk.bf16.mxu0 %vm30_vm0, %v156_v57 }
  0x9e   :  { %136 = vst.msk [vmem:[#allocation2 + $0x20] sm:$0xff] %vm86_vm11, %v131_v60 }
  0xa2   :  { %v151_v61 = vld [vmem:[#allocation2 + $0x30] sm:$0xff] }
  0xa5   :  { %v149_v62 = vld [vmem:[#allocation2 + $0x20] sm:$0xff] }
  0xa6   :  { %v155_v63 = vpack.c.bf16 %v151_v61, %v149_v62 }
  0xa8   :  { %284 = vmatmul.mubr.bf16.gmra.mrb[4].mxu0 %v155_v63 }
 0x16f   :  { %v277_v13 = vpop.f32.mrb[0].mxu0 }
 0x170   :  { %v297_v14 = vmul.f32 %v296_v11, %v277_v13  ;;  %v279_v15 = vpop.f32.mrb[1].mxu0 }
 0x171   :  { %v280_v16 = vpop.f32.mrb[2].mxu0 }
 0x172   :  { %v305_v17 = vadd.f32 %v304_v12, %v297_v14  ;;  %v298_v18 = vmul.f32 %v296_v11, %v280_v16  ;;  %v282_v19 = vpop.f32.mrb[3].mxu0 }
 0x174   :  { %1772 = vtanh.f32 %v305_v17  ;;  %v306_v21 = vadd.f32 %v304_v12, %v298_v18 }
 0x176   :  { %1774 = vtanh.f32 %v306_v21 }
 0x17b   :  { %v285_v23 = vpop.f32.mrb[4].mxu0 }
 0x17c   :  { %v299_v25 = vmul.f32 %v296_v11, %v285_v23  ;;  %v287_v26 = vpop.f32.mrb[5].mxu0 }
 0x17d   :  { %v288_v27 = vpop.f32.mrb[6].mxu0  ;;  %v1733_v26 = vld [vmem:[#allocation3 + $0xa8] sm:$0xff]  }
 0x17e   :  { %v1773_v28 = vpop.eup %1772  ;;  %v307_v29 = vadd.f32 %v304_v12, %v299_v25  ;;  %v300_v30 = vmul.f32 %v296_v11, %v288_v27  ;;  %v290_v31 = vpop.f32.mrb[7].mxu0  ;;  %v1732_v25 = vld [vmem:[#allocation3 + $0xa0] sm:$0xff]   ;;  %v1734_v27 = vld [vmem:[#allocation3 + $0xb0] sm:$0xff]  }
 0x17f   :  { %333 = vrot.lane.b32.xlu0 %v1773_v28, %s1837_s22  ;;  %v322_v32 = vrot.slane %v1773_v28, 7  ;;  %v315_v33 = vrot.slane %v1773_v28, 6  ;;  %v341_v37 = vrot.slane %v1773_v28, 1  ;;  %v352_v38 = vrot.slane %v1773_v28, 2  ;;  %767 = vmatpush1.bf16.msra.mxu0 %v1732_v25  ;;  %v1735_v28 = vld [vmem:[#allocation3 + $0xb8] sm:$0xff]  }
 0x180   :  { %v1775_v35 = vpop.eup %1774  ;;  %1776 = vtanh.f32 %v307_v29  ;;  %v308_v36 = vadd.f32 %v304_v12, %v300_v30  ;;  %768 = vmatprep.subr.bf16.mxu0 %v1840_v1  ;;  %v1736_v29 = vld [vmem:[#allocation3 + $0xc0] sm:$0xff]  }
 0x181   :  { %335 = vrot.lane.b32.xlu1 %v1775_v35, %s1837_s22  ;;  %v342_v39 = vrot.slane %v1775_v35, 1  ;;  %v323_v40 = vrot.slane %v1775_v35, 7  ;;  %v353_v41 = vrot.slane %v1775_v35, 2  ;;  %320 = vst.msk [vmem:[#allocation2] sm:$0xfc] %vm50_vm4, %v315_v33  ;;  %v316_v42 = vrot.slane %v1775_v35, 6 }
 0x182   :  { %1778 = vtanh.f32 %v308_v36  ;;  %v1652_v30 = vld [vmem:[%s2253_s2 + $0x2] sm:$0x3] }
 0x183   :  { %325 = vrot.lane.b32.xlu0 %v322_v32, %s1841_s6  ;;  %v343_v43 = vsel %vm76_vm6, %v341_v37, %v342_v39  ;;  %v324_v44 = vsel %vm53_vm3, %v322_v32, %v323_v40  ;;  %v354_v45 = vsel %vm90_vm1, %v352_v38, %v353_v41  ;;  %358 = vst.msk [vmem:[#allocation2 + $0x18] sm:$0x3f] %vm97_vm2, %v353_v41  ;;  %v1737_v40 = vld [vmem:[#allocation3 + $0xc8] sm:$0xff]  }
 0x184   :  { %v317_v46 = vsel %vm44_vm5, %v315_v33, %v316_v42  ;;  %357 = vst.msk [vmem:[#allocation2 + $0x8] sm:$0xff] %vm30_vm0, %v354_v45  ;;  %769 = vmatpush1.bf16.msra.mxu0 %v1733_v26  ;;  %v558_v31 = vrot.slane %v1652_v30, %v1952_v8  ;;  %v566_v32 = vrot.slane %v1652_v30, %v1957_v10  ;;  %v1738_v42 = vld [vmem:[#allocation3 + $0xd0] sm:$0xff]  }
 0x185   :  { %321 = vst.msk [vmem:[#allocation2 + $0x10] sm:$0xff] %vm30_vm0, %v317_v46  ;;  %346 = vrot.lane.b32.xlu1 %v342_v39, %s1842_s0  ;;  %770 = vmatprep.subr.bf16.mxu0 %v1840_v1 }
 0x187   :  { %344 = vrot.lane.b32.xlu0 %v343_v43, %s1842_s0 }
 0x188   :  { %771 = vmatpush1.bf16.msra.mxu0 %v1734_v27 }
 0x189   :  { %327 = vrot.lane.b32.xlu1 %v324_v44, %s1841_s6  ;;  %772 = vmatprep.subr.bf16.mxu0 %v1840_v1 }
 0x18a   :  { %v1777_v48 = vpop.eup %1776  ;;  %v408_v49 = vld [vmem:[#allocation2 + $0x18] sm:$0xff] }
 0x18b   :  { %379 = vrot.lane.b32.xlu0 %v1777_v48, %s1837_s22  ;;  %v406_v50 = vld [vmem:[#allocation2 + $0x8] sm:$0xff]  ;;  %v368_v51 = vrot.slane %v1777_v48, 7  ;;  %v387_v52 = vrot.slane %v1777_v48, 1  ;;  %v361_v53 = vrot.slane %v1777_v48, 6  ;;  %v398_v54 = vrot.slane %v1777_v48, 2 }
 0x18c   :  { %v1779_v55 = vpop.eup %1778  ;;  %v414_v56 = vpack.c.bf16 %v408_v49, %v406_v50  ;;  %773 = vmatpush1.bf16.msra.mxu0 %v1735_v28 }
 0x18d   :  { %381 = vrot.lane.b32.xlu1 %v1779_v55, %s1837_s22  ;;  %v369_v57 = vrot.slane %v1779_v55, 7  ;;  %v388_v58 = vrot.slane %v1779_v55, 1  ;;  %366 = vst.msk [vmem:[#allocation2 + $0x20] sm:$0xfc] %vm50_vm4, %v361_v53  ;;  %v362_v59 = vrot.slane %v1779_v55, 6  ;;  %v399_v60 = vrot.slane %v1779_v55, 2  ;;  %774 = vmatprep.subr.bf16.mxu0 %v1840_v1 }
 0x18e   :  { %1650 = vmatprep.mubr.msk.bf16.mxu1 %vm30_vm0, %v414_v56 }
 0x18f   :  { %371 = vrot.lane.b32.xlu0 %v368_v51, %s1841_s6  ;;  %v370_v61 = vsel %vm53_vm3, %v368_v51, %v369_v57  ;;  %v389_v62 = vsel %vm76_vm6, %v387_v52, %v388_v58  ;;  %v363_v63 = vsel %vm44_vm5, %v361_v53, %v362_v59  ;;  %v400_v0 = vsel %vm90_vm1, %v398_v54, %v399_v60  ;;  %v1740_v54 = vld [vmem:[#allocation3 + $0xe0] sm:$0xff]  }
 0x190   :  { %404 = vst.msk [vmem:[#allocation2 + $0x38] sm:$0x3f] %vm97_vm2, %v399_v60  ;;  %775 = vmatpush1.bf16.msra.mxu0 %v1736_v29 }
 0x191   :  { %367 = vst.msk [vmem:[#allocation2 + $0x30] sm:$0xff] %vm30_vm0, %v363_v63  ;;  %403 = vst.msk [vmem:[#allocation2 + $0x28] sm:$0xff] %vm30_vm0, %v400_v0  ;;  %373 = vrot.lane.b32.xlu1 %v370_v61, %s1841_s6  ;;  %776 = vmatprep.subr.bf16.mxu0 %v1840_v1 }
 0x193   :  { %390 = vrot.lane.b32.xlu0 %v389_v62, %s1842_s0 }
 0x194   :  { %777 = vmatpush1.bf16.msra.mxu0 %v1737_v40 }
 0x195   :  { %392 = vrot.lane.b32.xlu1 %v388_v58, %s1842_s0  ;;  %778 = vmatprep.subr.bf16.mxu0 %v1840_v1 }
 0x197   :  { %v412_v15 = vld [vmem:[#allocation2 + $0x38] sm:$0xff] }
 0x198   :  { %v410_v14 = vld [vmem:[#allocation2 + $0x28] sm:$0xff]  ;;  %779 = vmatpush1.bf16.msra.mxu0 %v1738_v42 }
 0x199   :  { %v416_v21 = vpack.c.bf16 %v412_v15, %v410_v14  ;;  %780 = vmatprep.subr.bf16.mxu0 %v1840_v1 }
 0x19c   :  { %781 = vmatpush1.bf16.msra.mxu0 %v1739_v47  ;;  %v1744_v47 = vld [vmem:[#allocation3 + $0x100] sm:$0xff]  }
 0x19d   :  { %782 = vmatprep.subr.bf16.mxu0 %v1840_v1 }
 0x1a0   :  { %783 = vmatpush1.bf16.msra.mxu0 %v1740_v54 }
 0x1a1   :  { %784 = vmatprep.subr.bf16.mxu0 %v1840_v1 }
 0x1f1   :  { %v334_v2 = vpop.permute.xlu0 %333 }
 0x1f3   :  { %v336_v3 = vpop.permute.xlu1 %335 }
 0x1f5   :  { %v326_v4 = vpop.permute.xlu0 %325 }
 0x1f6   :  { %331 = vst.msk [vmem:[#allocation2] sm:$0xfe] %vm63_vm7, %v326_v4  ;;  %v1741_v4 = vld [vmem:[#allocation3 + $0xe8] sm:$0xff]  }
 0x1f7   :  { %339 = vst.msk [vmem:[#allocation2] sm:$0xff] %vm73_vm8, %v334_v2  ;;  %v347_v5 = vpop.permute.xlu1 %346  ;;  %785 = vmatpush1.bf16.msra.mxu0 %v1741_v4  ;;  %v1749_v4 = vld [vmem:[#allocation3 + $0x128] sm:$0xff]  }
 0x1f8   :  { %1290 = vmatprep.subr.bf16.mxu0 %v1840_v1 }
 0x1f9   :  { %v345_v6 = vpop.permute.xlu0 %344 }
 0x1fa   :  { %350 = vst.msk [vmem:[#allocation2] sm:$0xff] %vm86_vm11, %v345_v6 }
 0x1fb   :  { %v328_v7 = vpop.permute.xlu1 %327 }
 0x1fc   :  { %332 = vst.msk [vmem:[#allocation2 + $0x10] sm:$0xff] %vm65_vm9, %v328_v7 }
 0x1fd   :  { %340 = vst.msk [vmem:[#allocation2 + $0x10] sm:$0xff] %vm73_vm8, %v336_v3  ;;  %v380_v9 = vpop.permute.xlu0 %379 }
 0x1fe   :  { %351 = vst.msk [vmem:[#allocation2 + $0x10] sm:$0x7f] %vm88_vm10, %v347_v5 }
 0x1ff   :  { %v382_v11 = vpop.permute.xlu1 %381 }
 0x201   :  { %v372_v12 = vpop.permute.xlu0 %371  ;;  %v405_v17 = vld [vmem:[#allocation2] sm:$0xff] }
 0x202   :  { %377 = vst.msk [vmem:[#allocation2 + $0x20] sm:$0xfe] %vm63_vm7, %v372_v12 }
 0x203   :  { %385 = vst.msk [vmem:[#allocation2 + $0x20] sm:$0xff] %vm73_vm8, %v380_v9  ;;  %v374_v13 = vpop.permute.xlu1 %373 }
 0x204   :  { %378 = vst.msk [vmem:[#allocation2 + $0x30] sm:$0xff] %vm65_vm9, %v374_v13 }
 0x205   :  { %386 = vst.msk [vmem:[#allocation2 + $0x30] sm:$0xff] %vm73_vm8, %v382_v11  ;;  %v391_v16 = vpop.permute.xlu0 %390  ;;  %v407_v18 = vld [vmem:[#allocation2 + $0x10] sm:$0xff] }
 0x206   :  { %396 = vst.msk [vmem:[#allocation2 + $0x20] sm:$0xff] %vm86_vm11, %v391_v16  ;;  %v413_v19 = vpack.c.bf16 %v407_v18, %v405_v17 }
 0x207   :  { %v393_v20 = vpop.permute.xlu1 %392 }
 0x208   :  { %397 = vst.msk [vmem:[#allocation2 + $0x30] sm:$0x7f] %vm88_vm10, %v393_v20  ;;  %537 = vmatmul.mubr.bf16.vlgmr.msra.gmra.mrb[0].mxu1 %v413_v19 }
 0x209   :  { %1651 = vmatprep.mubr.msk.bf16.mxu1 %vm30_vm0, %v416_v21 }
 0x20d   :  { %v409_v22 = vld [vmem:[#allocation2 + $0x20] sm:$0xff] }
 0x20f   :  { %v411_v23 = vld [vmem:[#allocation2 + $0x30] sm:$0xff] }
 0x210   :  { %v415_v24 = vpack.c.bf16 %v411_v23, %v409_v22 }
 0x212   :  { %545 = vmatmul.mubr.bf16.gmra.mrb[4].mxu1 %v415_v24 }
 0x2db   :  { %v538_v33 = vpop.f32.mrb[0].mxu1 }
 0x2dc   :  { %v559_v34 = vmul.f32 %v558_v31, %v538_v33  ;;  %v540_v35 = vpop.f32.mrb[1].mxu1 }
 0x2dd   :  { %v541_v36 = vpop.f32.mrb[2].mxu1 }
 0x2de   :  { %v567_v37 = vadd.f32 %v566_v32, %v559_v34  ;;  %v560_v38 = vmul.f32 %v558_v31, %v541_v36  ;;  %v543_v39 = vpop.f32.mrb[3].mxu1 }
 0x2e0   :  { %1780 = vtanh.f32 %v567_v37  ;;  %v568_v41 = vadd.f32 %v566_v32, %v560_v38 }
 0x2e2   :  { %1782 = vtanh.f32 %v568_v41 }
 0x2e5   :  { %v546_v43 = vpop.f32.mrb[4].mxu1 }
 0x2e6   :  { %v561_v44 = vmul.f32 %v558_v31, %v546_v43  ;;  %v548_v45 = vpop.f32.mrb[5].mxu1 }
 0x2e7   :  { %v549_v46 = vpop.f32.mrb[6].mxu1  ;;  %v1742_v45 = vld [vmem:[#allocation3 + $0xf0] sm:$0xff]  }
 0x2e8   :  { %v569_v48 = vadd.f32 %v566_v32, %v561_v44  ;;  %v562_v49 = vmul.f32 %v558_v31, %v549_v46  ;;  %v551_v50 = vpop.f32.mrb[7].mxu1  ;;  %1029 = vmatpush1.bf16.msra.mxu1 %v1742_v45  ;;  %v1743_v46 = vld [vmem:[#allocation3 + $0xf8] sm:$0xff]  }
 0x2e9   :  { %1030 = vmatprep.subr.bf16.mxu1 %v1840_v1  ;;  %v1665_v50 = vld [vmem:[%s2253_s2 + $0x4] sm:$0x3] }
 0x2ea   :  { %v1781_v51 = vpop.eup %1780  ;;  %1784 = vtanh.f32 %v569_v48  ;;  %v570_v52 = vadd.f32 %v566_v32, %v562_v49  ;;  %v1745_v48 = vld [vmem:[#allocation3 + $0x108] sm:$0xff]   ;;  %v1746_v49 = vld [vmem:[#allocation3 + $0x110] sm:$0xff]  }
 0x2eb   :  { %595 = vrot.lane.b32.xlu0 %v1781_v51, %s1837_s22  ;;  %v577_v53 = vrot.slane %v1781_v51, 6  ;;  %v584_v56 = vrot.slane %v1781_v51, 7  ;;  %v603_v57 = vrot.slane %v1781_v51, 1  ;;  %v614_v58 = vrot.slane %v1781_v51, 2 }
 0x2ec   :  { %v1783_v55 = vpop.eup %1782  ;;  %1786 = vtanh.f32 %v570_v52  ;;  %1031 = vmatpush1.bf16.msra.mxu1 %v1743_v46  ;;  %v820_v51 = vrot.slane %v1665_v50, %v1952_v8  ;;  %v828_v52 = vrot.slane %v1665_v50, %v1957_v10 }
 0x2ed   :  { %597 = vrot.lane.b32.xlu1 %v1783_v55, %s1837_s22  ;;  %v604_v59 = vrot.slane %v1783_v55, 1  ;;  %v585_v60 = vrot.slane %v1783_v55, 7  ;;  %v615_v61 = vrot.slane %v1783_v55, 2  ;;  %582 = vst.msk [vmem:[#allocation2] sm:$0xfc] %vm50_vm4, %v577_v53  ;;  %v578_v62 = vrot.slane %v1783_v55, 6  ;;  %1032 = vmatprep.subr.bf16.mxu1 %v1840_v1 }
 0x2ef   :  { %587 = vrot.lane.b32.xlu0 %v584_v56, %s1841_s6  ;;  %v605_v63 = vsel %vm76_vm6, %v603_v57, %v604_v59  ;;  %v586_v0 = vsel %vm53_vm3, %v584_v56, %v585_v60  ;;  %v616_v2 = vsel %vm90_vm1, %v614_v58, %v615_v61  ;;  %620 = vst.msk [vmem:[#allocation2 + $0x18] sm:$0x3f] %vm97_vm2, %v615_v61  ;;  %v1747_v60 = vld [vmem:[#allocation3 + $0x118] sm:$0xff]  }
 0x2f0   :  { %v579_v3 = vsel %vm44_vm5, %v577_v53, %v578_v62  ;;  %619 = vst.msk [vmem:[#allocation2 + $0x8] sm:$0xff] %vm30_vm0, %v616_v2  ;;  %1033 = vmatpush1.bf16.msra.mxu1 %v1744_v47  ;;  %v1748_v62 = vld [vmem:[#allocation3 + $0x120] sm:$0xff]  }
 0x2f1   :  { %583 = vst.msk [vmem:[#allocation2 + $0x10] sm:$0xff] %vm30_vm0, %v579_v3  ;;  %608 = vrot.lane.b32.xlu1 %v604_v59, %s1842_s0  ;;  %1034 = vmatprep.subr.bf16.mxu1 %v1840_v1 }
 0x2f3   :  { %606 = vrot.lane.b32.xlu0 %v605_v63, %s1842_s0 }
 0x2f4   :  { %v1785_v5 = vpop.eup %1784  ;;  %1035 = vmatpush1.bf16.msra.mxu1 %v1745_v48 }
 0x2f5   :  { %589 = vrot.lane.b32.xlu1 %v586_v0, %s1841_s6  ;;  %v623_v6 = vrot.slane %v1785_v5, 6  ;;  %v630_v11 = vrot.slane %v1785_v5, 7  ;;  %v649_v12 = vrot.slane %v1785_v5, 1  ;;  %v660_v13 = vrot.slane %v1785_v5, 2  ;;  %1036 = vmatprep.subr.bf16.mxu1 %v1840_v1 }
 0x2f6   :  { %v1787_v7 = vpop.eup %1786  ;;  %v670_v9 = vld [vmem:[#allocation2 + $0x18] sm:$0xff] }
 0x2f7   :  { %641 = vrot.lane.b32.xlu0 %v1785_v5, %s1837_s22  ;;  %v668_v14 = vld [vmem:[#allocation2 + $0x8] sm:$0xff]  ;;  %v631_v15 = vrot.slane %v1787_v7, 7  ;;  %v650_v16 = vrot.slane %v1787_v7, 1  ;;  %628 = vst.msk [vmem:[#allocation2 + $0x20] sm:$0xfc] %vm50_vm4, %v623_v6  ;;  %v624_v17 = vrot.slane %v1787_v7, 6 }
 0x2f8   :  { %v661_v18 = vrot.slane %v1787_v7, 2  ;;  %v676_v19 = vpack.c.bf16 %v670_v9, %v668_v14  ;;  %1037 = vmatpush1.bf16.msra.mxu1 %v1746_v49 }
 0x2f9   :  { %643 = vrot.lane.b32.xlu1 %v1787_v7, %s1837_s22  ;;  %v632_v20 = vsel %vm53_vm3, %v630_v11, %v631_v15  ;;  %v651_v21 = vsel %vm76_vm6, %v649_v12, %v650_v16  ;;  %v625_v22 = vsel %vm44_vm5, %v623_v6, %v624_v17  ;;  %1038 = vmatprep.subr.bf16.mxu1 %v1840_v1 }
 0x2fa   :  { %v662_v23 = vsel %vm90_vm1, %v660_v13, %v661_v18  ;;  %666 = vst.msk [vmem:[#allocation2 + $0x38] sm:$0x3f] %vm97_vm2, %v661_v18  ;;  %1663 = vmatprep.mubr.msk.bf16.mxu0 %vm30_vm0, %v676_v19  ;;  %v1750_v13 = vld [vmem:[#allocation3 + $0x130] sm:$0xff]  }
 0x2fb   :  { %629 = vst.msk [vmem:[#allocation2 + $0x30] sm:$0xff] %vm30_vm0, %v625_v22  ;;  %665 = vst.msk [vmem:[#allocation2 + $0x28] sm:$0xff] %vm30_vm0, %v662_v23  ;;  %633 = vrot.lane.b32.xlu0 %v630_v11, %s1841_s6 }
 0x2fc   :  { %1039 = vmatpush1.bf16.msra.mxu1 %v1747_v60 }
 0x2fd   :  { %635 = vrot.lane.b32.xlu1 %v632_v20, %s1841_s6  ;;  %1040 = vmatprep.subr.bf16.mxu1 %v1840_v1 }
 0x2ff   :  { %652 = vrot.lane.b32.xlu0 %v651_v21, %s1842_s0 }
 0x300   :  { %1041 = vmatpush1.bf16.msra.mxu1 %v1748_v62 }
 0x301   :  { %654 = vrot.lane.b32.xlu1 %v650_v16, %s1842_s0  ;;  %v674_v35 = vld [vmem:[#allocation2 + $0x38] sm:$0xff]  ;;  %1042 = vmatprep.subr.bf16.mxu1 %v1840_v1 }
 0x302   :  { %v672_v34 = vld [vmem:[#allocation2 + $0x28] sm:$0xff] }
 0x303   :  { %v678_v41 = vpack.c.bf16 %v674_v35, %v672_v34 }
 0x304   :  { %1043 = vmatpush1.bf16.msra.mxu1 %v1749_v4  ;;  %v1754_v4 = vld [vmem:[#allocation3 + $0x150] sm:$0xff]  }
 0x305   :  { %1044 = vmatprep.subr.bf16.mxu1 %v1840_v1 }
 0x308   :  { %1045 = vmatpush1.bf16.msra.mxu1 %v1750_v13 }
 0x309   :  { %1046 = vmatprep.subr.bf16.mxu1 %v1840_v1 }
 0x35d   :  { %v596_v24 = vpop.permute.xlu0 %595 }
 0x35f   :  { %v598_v25 = vpop.permute.xlu1 %597 }
 0x361   :  { %v588_v26 = vpop.permute.xlu0 %587 }
 0x362   :  { %593 = vst.msk [vmem:[#allocation2] sm:$0xfe] %vm63_vm7, %v588_v26  ;;  %v1751_v26 = vld [vmem:[#allocation3 + $0x138] sm:$0xff]  }
 0x363   :  { %601 = vst.msk [vmem:[#allocation2] sm:$0xff] %vm73_vm8, %v596_v24  ;;  %v609_v27 = vpop.permute.xlu1 %608  ;;  %1047 = vmatpush1.bf16.msra.mxu1 %v1751_v26  ;;  %v1759_v26 = vld [vmem:[#allocation3 + $0x178] sm:$0xff]  }
 0x364   :  { %1552 = vmatprep.subr.bf16.mxu1 %v1840_v1 }
 0x365   :  { %v607_v28 = vpop.permute.xlu0 %606 }
 0x366   :  { %612 = vst.msk [vmem:[#allocation2] sm:$0xff] %vm86_vm11, %v607_v28 }
 0x367   :  { %v590_v29 = vpop.permute.xlu1 %589 }
 0x368   :  { %594 = vst.msk [vmem:[#allocation2 + $0x10] sm:$0xff] %vm65_vm9, %v590_v29 }
 0x369   :  { %602 = vst.msk [vmem:[#allocation2 + $0x10] sm:$0xff] %vm73_vm8, %v598_v25  ;;  %v642_v30 = vpop.permute.xlu0 %641 }
 0x36a   :  { %613 = vst.msk [vmem:[#allocation2 + $0x10] sm:$0x7f] %vm88_vm10, %v609_v27 }
 0x36b   :  { %v644_v31 = vpop.permute.xlu1 %643 }
 0x36d   :  { %v634_v32 = vpop.permute.xlu0 %633  ;;  %v667_v37 = vld [vmem:[#allocation2] sm:$0xff] }
 0x36e   :  { %639 = vst.msk [vmem:[#allocation2 + $0x20] sm:$0xfe] %vm63_vm7, %v634_v32 }
 0x36f   :  { %647 = vst.msk [vmem:[#allocation2 + $0x20] sm:$0xff] %vm73_vm8, %v642_v30  ;;  %v636_v33 = vpop.permute.xlu1 %635 }
 0x370   :  { %640 = vst.msk [vmem:[#allocation2 + $0x30] sm:$0xff] %vm65_vm9, %v636_v33 }
 0x371   :  { %648 = vst.msk [vmem:[#allocation2 + $0x30] sm:$0xff] %vm73_vm8, %v644_v31  ;;  %v653_v36 = vpop.permute.xlu0 %652  ;;  %v669_v38 = vld [vmem:[#allocation2 + $0x10] sm:$0xff] }
 0x372   :  { %658 = vst.msk [vmem:[#allocation2 + $0x20] sm:$0xff] %vm86_vm11, %v653_v36  ;;  %v675_v39 = vpack.c.bf16 %v669_v38, %v667_v37 }
 0x373   :  { %v655_v40 = vpop.permute.xlu1 %654 }
 0x374   :  { %659 = vst.msk [vmem:[#allocation2 + $0x30] sm:$0x7f] %vm88_vm10, %v655_v40  ;;  %799 = vmatmul.mubr.bf16.vlgmr.msra.gmra.mrb[8].mxu0 %v675_v39 }
 0x375   :  { %1664 = vmatprep.mubr.msk.bf16.mxu0 %vm30_vm0, %v678_v41 }
 0x379   :  { %v671_v42 = vld [vmem:[#allocation2 + $0x20] sm:$0xff] }
 0x37b   :  { %v673_v43 = vld [vmem:[#allocation2 + $0x30] sm:$0xff] }
 0x37c   :  { %v677_v44 = vpack.c.bf16 %v673_v43, %v671_v42 }
 0x37e   :  { %807 = vmatmul.mubr.bf16.gmra.mrb[12].mxu0 %v677_v44 }
 0x447   :  { %v800_v53 = vpop.f32.mrb[8].mxu0 }
 0x448   :  { %v821_v54 = vmul.f32 %v820_v51, %v800_v53  ;;  %v802_v55 = vpop.f32.mrb[9].mxu0 }
 0x449   :  { %v803_v56 = vpop.f32.mrb[10].mxu0 }
 0x44a   :  { %v829_v57 = vadd.f32 %v828_v52, %v821_v54  ;;  %v822_v58 = vmul.f32 %v820_v51, %v803_v56  ;;  %v805_v59 = vpop.f32.mrb[11].mxu0 }
 0x44c   :  { %1788 = vtanh.f32 %v829_v57  ;;  %v830_v61 = vadd.f32 %v828_v52, %v822_v58 }
 0x44e   :  { %1790 = vtanh.f32 %v830_v61 }
 0x451   :  { %v808_v63 = vpop.f32.mrb[12].mxu0 }
 0x452   :  { %v823_v0 = vmul.f32 %v820_v51, %v808_v63  ;;  %v810_v2 = vpop.f32.mrb[13].mxu0 }
 0x453   :  { %v811_v3 = vpop.f32.mrb[14].mxu0  ;;  %v1752_v2 = vld [vmem:[#allocation3 + $0x140] sm:$0xff]  }
 0x454   :  { %v831_v5 = vadd.f32 %v828_v52, %v823_v0  ;;  %v824_v6 = vmul.f32 %v820_v51, %v811_v3  ;;  %v813_v7 = vpop.f32.mrb[15].mxu0  ;;  %1291 = vmatpush1.bf16.msra.mxu0 %v1752_v2  ;;  %v1753_v3 = vld [vmem:[#allocation3 + $0x148] sm:$0xff]  }
 0x455   :  { %1292 = vmatprep.subr.bf16.mxu0 %v1840_v1  ;;  %v1678_v7 = vld [vmem:[%s2253_s2 + $0x6] sm:$0x3] }
 0x456   :  { %v1789_v9 = vpop.eup %1788  ;;  %1792 = vtanh.f32 %v831_v5  ;;  %v832_v11 = vadd.f32 %v828_v52, %v824_v6  ;;  %v1755_v5 = vld [vmem:[#allocation3 + $0x158] sm:$0xff]   ;;  %v1756_v6 = vld [vmem:[#allocation3 + $0x160] sm:$0xff]  }
 0x457   :  { %857 = vrot.lane.b32.xlu0 %v1789_v9, %s1837_s22  ;;  %v839_v12 = vrot.slane %v1789_v9, 6  ;;  %v846_v15 = vrot.slane %v1789_v9, 7  ;;  %v865_v16 = vrot.slane %v1789_v9, 1  ;;  %v876_v17 = vrot.slane %v1789_v9, 2 }
 0x458   :  { %v1791_v14 = vpop.eup %1790  ;;  %1794 = vtanh.f32 %v832_v11  ;;  %1293 = vmatpush1.bf16.msra.mxu0 %v1753_v3  ;;  %v1082_v9 = vrot.slane %v1678_v7, %v1952_v8  ;;  %v1090_v11 = vrot.slane %v1678_v7, %v1957_v10 }
 0x459   :  { %859 = vrot.lane.b32.xlu1 %v1791_v14, %s1837_s22  ;;  %v866_v18 = vrot.slane %v1791_v14, 1  ;;  %v847_v19 = vrot.slane %v1791_v14, 7  ;;  %v877_v20 = vrot.slane %v1791_v14, 2  ;;  %844 = vst.msk [vmem:[#allocation2] sm:$0xfc] %vm50_vm4, %v839_v12  ;;  %v840_v21 = vrot.slane %v1791_v14, 6  ;;  %1294 = vmatprep.subr.bf16.mxu0 %v1840_v1 }
 0x45b   :  { %849 = vrot.lane.b32.xlu0 %v846_v15, %s1841_s6  ;;  %v867_v22 = vsel %vm76_vm6, %v865_v16, %v866_v18  ;;  %v848_v23 = vsel %vm53_vm3, %v846_v15, %v847_v19  ;;  %v878_v24 = vsel %vm90_vm1, %v876_v17, %v877_v20  ;;  %882 = vst.msk [vmem:[#allocation2 + $0x18] sm:$0x3f] %vm97_vm2, %v877_v20  ;;  %v1757_v19 = vld [vmem:[#allocation3 + $0x168] sm:$0xff]  }
 0x45c   :  { %v841_v25 = vsel %vm44_vm5, %v839_v12, %v840_v21  ;;  %881 = vst.msk [vmem:[#allocation2 + $0x8] sm:$0xff] %vm30_vm0, %v878_v24  ;;  %1295 = vmatpush1.bf16.msra.mxu0 %v1754_v4  ;;  %v1758_v21 = vld [vmem:[#allocation3 + $0x170] sm:$0xff]  }
 0x45d   :  { %845 = vst.msk [vmem:[#allocation2 + $0x10] sm:$0xff] %vm30_vm0, %v841_v25  ;;  %870 = vrot.lane.b32.xlu1 %v866_v18, %s1842_s0  ;;  %1296 = vmatprep.subr.bf16.mxu0 %v1840_v1 }
 0x45f   :  { %868 = vrot.lane.b32.xlu0 %v867_v22, %s1842_s0 }
 0x460   :  { %v1793_v27 = vpop.eup %1792  ;;  %1297 = vmatpush1.bf16.msra.mxu0 %v1755_v5 }
 0x461   :  { %851 = vrot.lane.b32.xlu1 %v848_v23, %s1841_s6  ;;  %v885_v28 = vrot.slane %v1793_v27, 6  ;;  %v892_v31 = vrot.slane %v1793_v27, 7  ;;  %v911_v32 = vrot.slane %v1793_v27, 1  ;;  %v922_v33 = vrot.slane %v1793_v27, 2  ;;  %1298 = vmatprep.subr.bf16.mxu0 %v1840_v1 }
 0x462   :  { %v1795_v29 = vpop.eup %1794  ;;  %v932_v30 = vld [vmem:[#allocation2 + $0x18] sm:$0xff] }
 0x463   :  { %903 = vrot.lane.b32.xlu0 %v1793_v27, %s1837_s22  ;;  %v930_v34 = vld [vmem:[#allocation2 + $0x8] sm:$0xff]  ;;  %v893_v35 = vrot.slane %v1795_v29, 7  ;;  %v912_v36 = vrot.slane %v1795_v29, 1  ;;  %890 = vst.msk [vmem:[#allocation2 + $0x20] sm:$0xfc] %vm50_vm4, %v885_v28  ;;  %v886_v37 = vrot.slane %v1795_v29, 6 }
 0x464   :  { %v923_v38 = vrot.slane %v1795_v29, 2  ;;  %v938_v39 = vpack.c.bf16 %v932_v30, %v930_v34  ;;  %1299 = vmatpush1.bf16.msra.mxu0 %v1756_v6 }
 0x465   :  { %905 = vrot.lane.b32.xlu1 %v1795_v29, %s1837_s22  ;;  %v894_v40 = vsel %vm53_vm3, %v892_v31, %v893_v35  ;;  %v913_v41 = vsel %vm76_vm6, %v911_v32, %v912_v36  ;;  %v887_v42 = vsel %vm44_vm5, %v885_v28, %v886_v37  ;;  %1300 = vmatprep.subr.bf16.mxu0 %v1840_v1 }
 0x466   :  { %v924_v43 = vsel %vm90_vm1, %v922_v33, %v923_v38  ;;  %928 = vst.msk [vmem:[#allocation2 + $0x38] sm:$0x3f] %vm97_vm2, %v923_v38  ;;  %1676 = vmatprep.mubr.msk.bf16.mxu1 %vm30_vm0, %v938_v39  ;;  %v1760_v33 = vld [vmem:[#allocation3 + $0x180] sm:$0xff]  }
 0x467   :  { %891 = vst.msk [vmem:[#allocation2 + $0x30] sm:$0xff] %vm30_vm0, %v887_v42  ;;  %927 = vst.msk [vmem:[#allocation2 + $0x28] sm:$0xff] %vm30_vm0, %v924_v43  ;;  %895 = vrot.lane.b32.xlu0 %v892_v31, %s1841_s6 }
 0x468   :  { %1301 = vmatpush1.bf16.msra.mxu0 %v1757_v19 }
 0x469   :  { %897 = vrot.lane.b32.xlu1 %v894_v40, %s1841_s6  ;;  %1302 = vmatprep.subr.bf16.mxu0 %v1840_v1 }
 0x46b   :  { %914 = vrot.lane.b32.xlu0 %v913_v41, %s1842_s0 }
 0x46c   :  { %1303 = vmatpush1.bf16.msra.mxu0 %v1758_v21 }
 0x46d   :  { %916 = vrot.lane.b32.xlu1 %v912_v36, %s1842_s0  ;;  %v936_v55 = vld [vmem:[#allocation2 + $0x38] sm:$0xff]  ;;  %1304 = vmatprep.subr.bf16.mxu0 %v1840_v1 }
 0x46e   :  { %v934_v54 = vld [vmem:[#allocation2 + $0x28] sm:$0xff] }
 0x46f   :  { %v940_v61 = vpack.c.bf16 %v936_v55, %v934_v54 }
 0x470   :  { %1305 = vmatpush1.bf16.msra.mxu0 %v1759_v26  ;;  %v1764_v26 = vld [vmem:[#allocation3 + $0x1a0] sm:$0xff]  }
 0x471   :  { %1306 = vmatprep.subr.bf16.mxu0 %v1840_v1 }
 0x474   :  { %1307 = vmatpush1.bf16.msra.mxu0 %v1760_v33 }
 0x475   :  { %1308 = vmatprep.subr.bf16.mxu0 %v1840_v1 }
 0x4c9   :  { %v858_v44 = vpop.permute.xlu0 %857 }
 0x4cb   :  { %v860_v45 = vpop.permute.xlu1 %859 }
 0x4cd   :  { %v850_v46 = vpop.permute.xlu0 %849 }
 0x4ce   :  { %855 = vst.msk [vmem:[#allocation2] sm:$0xfe] %vm63_vm7, %v850_v46  ;;  %v1761_v46 = vld [vmem:[#allocation3 + $0x188] sm:$0xff]  }
 0x4cf   :  { %863 = vst.msk [vmem:[#allocation2] sm:$0xff] %vm73_vm8, %v858_v44  ;;  %v871_v47 = vpop.permute.xlu1 %870  ;;  %1309 = vmatpush1.bf16.msra.mxu0 %v1761_v46  ;;  %v1769_v46 = vld [vmem:[#allocation3 + $0x1c8] sm:$0xff]  }
 0x4d1   :  { %v869_v48 = vpop.permute.xlu0 %868 }
 0x4d2   :  { %874 = vst.msk [vmem:[#allocation2] sm:$0xff] %vm86_vm11, %v869_v48 }
 0x4d3   :  { %v852_v49 = vpop.permute.xlu1 %851 }
 0x4d4   :  { %856 = vst.msk [vmem:[#allocation2 + $0x10] sm:$0xff] %vm65_vm9, %v852_v49 }
 0x4d5   :  { %864 = vst.msk [vmem:[#allocation2 + $0x10] sm:$0xff] %vm73_vm8, %v860_v45  ;;  %v904_v50 = vpop.permute.xlu0 %903 }
 0x4d6   :  { %875 = vst.msk [vmem:[#allocation2 + $0x10] sm:$0x7f] %vm88_vm10, %v871_v47 }
 0x4d7   :  { %v906_v51 = vpop.permute.xlu1 %905 }
 0x4d9   :  { %v896_v52 = vpop.permute.xlu0 %895  ;;  %v929_v57 = vld [vmem:[#allocation2] sm:$0xff] }
 0x4da   :  { %901 = vst.msk [vmem:[#allocation2 + $0x20] sm:$0xfe] %vm63_vm7, %v896_v52 }
 0x4db   :  { %909 = vst.msk [vmem:[#allocation2 + $0x20] sm:$0xff] %vm73_vm8, %v904_v50  ;;  %v898_v53 = vpop.permute.xlu1 %897 }
 0x4dc   :  { %902 = vst.msk [vmem:[#allocation2 + $0x30] sm:$0xff] %vm65_vm9, %v898_v53 }
 0x4dd   :  { %910 = vst.msk [vmem:[#allocation2 + $0x30] sm:$0xff] %vm73_vm8, %v906_v51  ;;  %v915_v56 = vpop.permute.xlu0 %914  ;;  %v931_v58 = vld [vmem:[#allocation2 + $0x10] sm:$0xff] }
 0x4de   :  { %920 = vst.msk [vmem:[#allocation2 + $0x20] sm:$0xff] %vm86_vm11, %v915_v56  ;;  %v937_v59 = vpack.c.bf16 %v931_v58, %v929_v57 }
 0x4df   :  { %v917_v60 = vpop.permute.xlu1 %916 }
 0x4e0   :  { %921 = vst.msk [vmem:[#allocation2 + $0x30] sm:$0x7f] %vm88_vm10, %v917_v60  ;;  %1061 = vmatmul.mubr.bf16.vlgmr.msra.gmra.mrb[8].mxu1 %v937_v59 }
 0x4e1   :  { %1677 = vmatprep.mubr.msk.bf16.mxu1 %vm30_vm0, %v940_v61 }
 0x4e5   :  { %v933_v62 = vld [vmem:[#allocation2 + $0x20] sm:$0xff] }
 0x4e7   :  { %v935_v63 = vld [vmem:[#allocation2 + $0x30] sm:$0xff] }
 0x4e8   :  { %v939_v0 = vpack.c.bf16 %v935_v63, %v933_v62 }
 0x4ea   :  { %1069 = vmatmul.mubr.bf16.gmra.mrb[12].mxu1 %v939_v0 }
 0x5b3   :  { %v1062_v12 = vpop.f32.mrb[8].mxu1 }
 0x5b4   :  { %v1083_v13 = vmul.f32 %v1082_v9, %v1062_v12  ;;  %v1064_v14 = vpop.f32.mrb[9].mxu1 }
 0x5b5   :  { %v1065_v15 = vpop.f32.mrb[10].mxu1 }
 0x5b6   :  { %v1091_v16 = vadd.f32 %v1090_v11, %v1083_v13  ;;  %v1084_v17 = vmul.f32 %v1082_v9, %v1065_v15  ;;  %v1067_v18 = vpop.f32.mrb[11].mxu1 }
 0x5b8   :  { %1796 = vtanh.f32 %v1091_v16  ;;  %v1092_v20 = vadd.f32 %v1090_v11, %v1084_v17 }
 0x5ba   :  { %1798 = vtanh.f32 %v1092_v20 }
 0x5bd   :  { %v1070_v22 = vpop.f32.mrb[12].mxu1 }
 0x5be   :  { %v1085_v23 = vmul.f32 %v1082_v9, %v1070_v22  ;;  %v1072_v24 = vpop.f32.mrb[13].mxu1 }
 0x5bf   :  { %v1073_v25 = vpop.f32.mrb[14].mxu1  ;;  %v1762_v24 = vld [vmem:[#allocation3 + $0x190] sm:$0xff]  }
 0x5c0   :  { %v1093_v27 = vadd.f32 %v1090_v11, %v1085_v23  ;;  %v1086_v28 = vmul.f32 %v1082_v9, %v1073_v25  ;;  %v1075_v29 = vpop.f32.mrb[15].mxu1  ;;  %1553 = vmatpush1.bf16.msra.mxu1 %v1762_v24  ;;  %v1763_v25 = vld [vmem:[#allocation3 + $0x198] sm:$0xff]  }
 0x5c1   :  { %1554 = vmatprep.subr.bf16.mxu1 %v1840_v1  ;;  %v1691_v29 = vld [vmem:[%s2253_s2 + $0x8] sm:$0x3] }
 0x5c2   :  { %v1797_v30 = vpop.eup %1796  ;;  %1800 = vtanh.f32 %v1093_v27  ;;  %v1094_v31 = vadd.f32 %v1090_v11, %v1086_v28  ;;  %v1765_v27 = vld [vmem:[#allocation3 + $0x1a8] sm:$0xff]   ;;  %v1766_v28 = vld [vmem:[#allocation3 + $0x1b0] sm:$0xff]  }
 0x5c3   :  { %1119 = vrot.lane.b32.xlu0 %v1797_v30, %s1837_s22  ;;  %v1101_v32 = vrot.slane %v1797_v30, 6  ;;  %v1108_v35 = vrot.slane %v1797_v30, 7  ;;  %v1127_v36 = vrot.slane %v1797_v30, 1  ;;  %v1138_v37 = vrot.slane %v1797_v30, 2 }
 0x5c4   :  { %v1799_v34 = vpop.eup %1798  ;;  %1802 = vtanh.f32 %v1094_v31  ;;  %1555 = vmatpush1.bf16.msra.mxu1 %v1763_v25  ;;  %v1344_v30 = vrot.slane %v1691_v29, %v1952_v8  ;;  %v1352_v31 = vrot.slane %v1691_v29, %v1957_v10 }
 0x5c5   :  { %1121 = vrot.lane.b32.xlu1 %v1799_v34, %s1837_s22  ;;  %v1128_v38 = vrot.slane %v1799_v34, 1  ;;  %v1109_v39 = vrot.slane %v1799_v34, 7  ;;  %v1139_v40 = vrot.slane %v1799_v34, 2  ;;  %1106 = vst.msk [vmem:[#allocation2] sm:$0xfc] %vm50_vm4, %v1101_v32  ;;  %v1102_v41 = vrot.slane %v1799_v34, 6  ;;  %1556 = vmatprep.subr.bf16.mxu1 %v1840_v1 }
 0x5c7   :  { %1111 = vrot.lane.b32.xlu0 %v1108_v35, %s1841_s6  ;;  %v1129_v42 = vsel %vm76_vm6, %v1127_v36, %v1128_v38  ;;  %v1110_v43 = vsel %vm53_vm3, %v1108_v35, %v1109_v39  ;;  %v1140_v44 = vsel %vm90_vm1, %v1138_v37, %v1139_v40  ;;  %1144 = vst.msk [vmem:[#allocation2 + $0x18] sm:$0x3f] %vm97_vm2, %v1139_v40  ;;  %v1767_v39 = vld [vmem:[#allocation3 + $0x1b8] sm:$0xff]  }
 0x5c8   :  { %v1103_v45 = vsel %vm44_vm5, %v1101_v32, %v1102_v41  ;;  %1143 = vst.msk [vmem:[#allocation2 + $0x8] sm:$0xff] %vm30_vm0, %v1140_v44  ;;  %1557 = vmatpush1.bf16.msra.mxu1 %v1764_v26  ;;  %v1768_v41 = vld [vmem:[#allocation3 + $0x1c0] sm:$0xff]  }
 0x5c9   :  { %1107 = vst.msk [vmem:[#allocation2 + $0x10] sm:$0xff] %vm30_vm0, %v1103_v45  ;;  %1132 = vrot.lane.b32.xlu1 %v1128_v38, %s1842_s0  ;;  %1558 = vmatprep.subr.bf16.mxu1 %v1840_v1 }
 0x5cb   :  { %1130 = vrot.lane.b32.xlu0 %v1129_v42, %s1842_s0 }
 0x5cc   :  { %v1801_v47 = vpop.eup %1800  ;;  %1559 = vmatpush1.bf16.msra.mxu1 %v1765_v27 }
 0x5cd   :  { %1113 = vrot.lane.b32.xlu1 %v1110_v43, %s1841_s6  ;;  %v1147_v48 = vrot.slane %v1801_v47, 6  ;;  %v1154_v51 = vrot.slane %v1801_v47, 7  ;;  %v1173_v52 = vrot.slane %v1801_v47, 1  ;;  %v1184_v53 = vrot.slane %v1801_v47, 2  ;;  %1560 = vmatprep.subr.bf16.mxu1 %v1840_v1 }
 0x5ce   :  { %v1803_v49 = vpop.eup %1802  ;;  %v1194_v50 = vld [vmem:[#allocation2 + $0x18] sm:$0xff] }
 0x5cf   :  { %1165 = vrot.lane.b32.xlu0 %v1801_v47, %s1837_s22  ;;  %v1192_v54 = vld [vmem:[#allocation2 + $0x8] sm:$0xff]  ;;  %v1155_v55 = vrot.slane %v1803_v49, 7  ;;  %v1174_v56 = vrot.slane %v1803_v49, 1  ;;  %1152 = vst.msk [vmem:[#allocation2 + $0x20] sm:$0xfc] %vm50_vm4, %v1147_v48  ;;  %v1148_v57 = vrot.slane %v1803_v49, 6 }
 0x5d0   :  { %v1185_v58 = vrot.slane %v1803_v49, 2  ;;  %v1200_v59 = vpack.c.bf16 %v1194_v50, %v1192_v54  ;;  %1561 = vmatpush1.bf16.msra.mxu1 %v1766_v28 }
 0x5d1   :  { %1167 = vrot.lane.b32.xlu1 %v1803_v49, %s1837_s22  ;;  %v1156_v60 = vsel %vm53_vm3, %v1154_v51, %v1155_v55  ;;  %v1175_v61 = vsel %vm76_vm6, %v1173_v52, %v1174_v56  ;;  %v1149_v62 = vsel %vm44_vm5, %v1147_v48, %v1148_v57  ;;  %1562 = vmatprep.subr.bf16.mxu1 %v1840_v1 }
 0x5d2   :  { %v1186_v63 = vsel %vm90_vm1, %v1184_v53, %v1185_v58  ;;  %1190 = vst.msk [vmem:[#allocation2 + $0x38] sm:$0x3f] %vm97_vm2, %v1185_v58  ;;  %1689 = vmatprep.mubr.msk.bf16.mxu0 %vm30_vm0, %v1200_v59  ;;  %v1770_v53 = vld [vmem:[#allocation3 + $0x1d0] sm:$0xff]  }
 0x5d3   :  { %1153 = vst.msk [vmem:[#allocation2 + $0x30] sm:$0xff] %vm30_vm0, %v1149_v62  ;;  %1189 = vst.msk [vmem:[#allocation2 + $0x28] sm:$0xff] %vm30_vm0, %v1186_v63  ;;  %1157 = vrot.lane.b32.xlu0 %v1154_v51, %s1841_s6 }
 0x5d4   :  { %1563 = vmatpush1.bf16.msra.mxu1 %v1767_v39 }
 0x5d5   :  { %1159 = vrot.lane.b32.xlu1 %v1156_v60, %s1841_s6  ;;  %1564 = vmatprep.subr.bf16.mxu1 %v1840_v1 }
 0x5d7   :  { %1176 = vrot.lane.b32.xlu0 %v1175_v61, %s1842_s0 }
 0x5d8   :  { %1565 = vmatpush1.bf16.msra.mxu1 %v1768_v41 }
 0x5d9   :  { %1178 = vrot.lane.b32.xlu1 %v1174_v56, %s1842_s0  ;;  %v1198_v14 = vld [vmem:[#allocation2 + $0x38] sm:$0xff]  ;;  %1566 = vmatprep.subr.bf16.mxu1 %v1840_v1 }
 0x5da   :  { %v1196_v13 = vld [vmem:[#allocation2 + $0x28] sm:$0xff] }
 0x5db   :  { %v1202_v20 = vpack.c.bf16 %v1198_v14, %v1196_v13 }
 0x5dc   :  { %1567 = vmatpush1.bf16.msra.mxu1 %v1769_v46 }
 0x5dd   :  { %1568 = vmatprep.subr.bf16.mxu1 %v1840_v1 }
 0x5e0   :  { %1569 = vmatpush1.bf16.msra.mxu1 %v1770_v53 }
 0x5e1   :  { %1570 = vmatprep.subr.bf16.mxu1 %v1840_v1 }
 0x635   :  { %v1120_v0 = vpop.permute.xlu0 %1119 }
 0x637   :  { %v1122_v2 = vpop.permute.xlu1 %1121 }
 0x639   :  { %v1112_v3 = vpop.permute.xlu0 %1111 }
 0x63a   :  { %1117 = vst.msk [vmem:[#allocation2] sm:$0xfe] %vm63_vm7, %v1112_v3  ;;  %v1771_v3 = vld [vmem:[#allocation3 + $0x1d8] sm:$0xff]  }
 0x63b   :  { %1125 = vst.msk [vmem:[#allocation2] sm:$0xff] %vm73_vm8, %v1120_v0  ;;  %v1133_v4 = vpop.permute.xlu1 %1132  ;;  %1571 = vmatpush1.bf16.msra.mxu1 %v1771_v3 }
 0x63d   :  { %v1131_v5 = vpop.permute.xlu0 %1130 }
 0x63e   :  { %1136 = vst.msk [vmem:[#allocation2] sm:$0xff] %vm86_vm11, %v1131_v5 }
 0x63f   :  { %v1114_v6 = vpop.permute.xlu1 %1113 }
 0x640   :  { %1118 = vst.msk [vmem:[#allocation2 + $0x10] sm:$0xff] %vm65_vm9, %v1114_v6 }
 0x641   :  { %1126 = vst.msk [vmem:[#allocation2 + $0x10] sm:$0xff] %vm73_vm8, %v1122_v2  ;;  %v1166_v7 = vpop.permute.xlu0 %1165 }
 0x642   :  { %1137 = vst.msk [vmem:[#allocation2 + $0x10] sm:$0x7f] %vm88_vm10, %v1133_v4 }
 0x643   :  { %v1168_v9 = vpop.permute.xlu1 %1167 }
 0x645   :  { %v1158_v11 = vpop.permute.xlu0 %1157  ;;  %v1191_v16 = vld [vmem:[#allocation2] sm:$0xff] }
 0x646   :  { %1163 = vst.msk [vmem:[#allocation2 + $0x20] sm:$0xfe] %vm63_vm7, %v1158_v11 }
 0x647   :  { %1171 = vst.msk [vmem:[#allocation2 + $0x20] sm:$0xff] %vm73_vm8, %v1166_v7  ;;  %v1160_v12 = vpop.permute.xlu1 %1159 }
 0x648   :  { %1164 = vst.msk [vmem:[#allocation2 + $0x30] sm:$0xff] %vm65_vm9, %v1160_v12 }
 0x649   :  { %1172 = vst.msk [vmem:[#allocation2 + $0x30] sm:$0xff] %vm73_vm8, %v1168_v9  ;;  %v1177_v15 = vpop.permute.xlu0 %1176  ;;  %v1193_v17 = vld [vmem:[#allocation2 + $0x10] sm:$0xff] }
 0x64a   :  { %1182 = vst.msk [vmem:[#allocation2 + $0x20] sm:$0xff] %vm86_vm11, %v1177_v15  ;;  %v1199_v18 = vpack.c.bf16 %v1193_v17, %v1191_v16 }
 0x64b   :  { %v1179_v19 = vpop.permute.xlu1 %1178 }
 0x64c   :  { %1183 = vst.msk [vmem:[#allocation2 + $0x30] sm:$0x7f] %vm88_vm10, %v1179_v19  ;;  %1323 = vmatmul.mubr.bf16.vlgmr.msra.gmra.mrb[16].mxu0 %v1199_v18 }
 0x64d   :  { %1690 = vmatprep.mubr.msk.bf16.mxu0 %vm30_vm0, %v1202_v20 }
 0x651   :  { %v1195_v21 = vld [vmem:[#allocation2 + $0x20] sm:$0xff] }
 0x653   :  { %v1197_v22 = vld [vmem:[#allocation2 + $0x30] sm:$0xff] }
 0x654   :  { %v1201_v23 = vpack.c.bf16 %v1197_v22, %v1195_v21 }
 0x656   :  { %1331 = vmatmul.mubr.bf16.gmra.mrb[20].mxu0 %v1201_v23 }
 0x71f   :  { %v1324_v32 = vpop.f32.mrb[16].mxu0 }
 0x720   :  { %v1345_v33 = vmul.f32 %v1344_v30, %v1324_v32  ;;  %v1326_v34 = vpop.f32.mrb[17].mxu0 }
 0x721   :  { %v1327_v35 = vpop.f32.mrb[18].mxu0 }
 0x722   :  { %v1353_v36 = vadd.f32 %v1352_v31, %v1345_v33  ;;  %v1346_v37 = vmul.f32 %v1344_v30, %v1327_v35  ;;  %v1329_v38 = vpop.f32.mrb[19].mxu0 }
 0x724   :  { %1804 = vtanh.f32 %v1353_v36  ;;  %v1354_v40 = vadd.f32 %v1352_v31, %v1346_v37 }
 0x726   :  { %1806 = vtanh.f32 %v1354_v40 }
 0x729   :  { %v1332_v42 = vpop.f32.mrb[20].mxu0 }
 0x72a   :  { %v1347_v43 = vmul.f32 %v1344_v30, %v1332_v42  ;;  %v1334_v44 = vpop.f32.mrb[21].mxu0 }
 0x72b   :  { %v1335_v45 = vpop.f32.mrb[22].mxu0 }
 0x72c   :  { %v1355_v47 = vadd.f32 %v1352_v31, %v1347_v43  ;;  %v1348_v48 = vmul.f32 %v1344_v30, %v1335_v45  ;;  %v1337_v49 = vpop.f32.mrb[23].mxu0  ;;  %v1704_v43 = vld [vmem:[%s2253_s2 + $0xa] sm:$0x3] }
 0x72d   :  { %v1606_v44 = vrot.slane %v1704_v43, %v1952_v8  ;;  %v1614_v45 = vrot.slane %v1704_v43, %v1957_v10 }
 0x72e   :  { %v1805_v50 = vpop.eup %1804  ;;  %1808 = vtanh.f32 %v1355_v47  ;;  %v1356_v51 = vadd.f32 %v1352_v31, %v1348_v48 }
 0x72f   :  { %1381 = vrot.lane.b32.xlu0 %v1805_v50, %s1837_s22  ;;  %v1363_v52 = vrot.slane %v1805_v50, 6  ;;  %v1370_v55 = vrot.slane %v1805_v50, 7  ;;  %v1389_v56 = vrot.slane %v1805_v50, 1  ;;  %v1400_v57 = vrot.slane %v1805_v50, 2 }
 0x730   :  { %v1807_v54 = vpop.eup %1806  ;;  %1810 = vtanh.f32 %v1356_v51 }
 0x731   :  { %1383 = vrot.lane.b32.xlu1 %v1807_v54, %s1837_s22  ;;  %v1390_v58 = vrot.slane %v1807_v54, 1  ;;  %v1371_v59 = vrot.slane %v1807_v54, 7  ;;  %v1401_v60 = vrot.slane %v1807_v54, 2  ;;  %1368 = vst.msk [vmem:[#allocation2] sm:$0xfc] %vm50_vm4, %v1363_v52  ;;  %v1364_v61 = vrot.slane %v1807_v54, 6 }
 0x733   :  { %1373 = vrot.lane.b32.xlu0 %v1370_v55, %s1841_s6  ;;  %v1391_v62 = vsel %vm76_vm6, %v1389_v56, %v1390_v58  ;;  %v1372_v63 = vsel %vm53_vm3, %v1370_v55, %v1371_v59  ;;  %v1402_v0 = vsel %vm90_vm1, %v1400_v57, %v1401_v60  ;;  %1406 = vst.msk [vmem:[#allocation2 + $0x18] sm:$0x3f] %vm97_vm2, %v1401_v60 }
 0x734   :  { %v1365_v2 = vsel %vm44_vm5, %v1363_v52, %v1364_v61  ;;  %1405 = vst.msk [vmem:[#allocation2 + $0x8] sm:$0xff] %vm30_vm0, %v1402_v0 }
 0x735   :  { %1369 = vst.msk [vmem:[#allocation2 + $0x10] sm:$0xff] %vm30_vm0, %v1365_v2  ;;  %1394 = vrot.lane.b32.xlu1 %v1390_v58, %s1842_s0 }
 0x737   :  { %1392 = vrot.lane.b32.xlu0 %v1391_v62, %s1842_s0 }
 0x738   :  { %v1809_v1 = vpop.eup %1808 }
 0x739   :  { %1375 = vrot.lane.b32.xlu1 %v1372_v63, %s1841_s6  ;;  %v1409_v4 = vrot.slane %v1809_v1, 6  ;;  %v1416_v7 = vrot.slane %v1809_v1, 7  ;;  %v1435_v9 = vrot.slane %v1809_v1, 1  ;;  %v1446_v11 = vrot.slane %v1809_v1, 2 }
 0x73a   :  { %v1811_v5 = vpop.eup %1810  ;;  %v1456_v6 = vld [vmem:[#allocation2 + $0x18] sm:$0xff] }
 0x73b   :  { %1427 = vrot.lane.b32.xlu0 %v1809_v1, %s1837_s22  ;;  %v1454_v12 = vld [vmem:[#allocation2 + $0x8] sm:$0xff]  ;;  %v1417_v13 = vrot.slane %v1811_v5, 7  ;;  %v1436_v14 = vrot.slane %v1811_v5, 1  ;;  %1414 = vst.msk [vmem:[#allocation2 + $0x20] sm:$0xfc] %vm50_vm4, %v1409_v4  ;;  %v1410_v15 = vrot.slane %v1811_v5, 6 }
 0x73c   :  { %v1447_v16 = vrot.slane %v1811_v5, 2  ;;  %v1462_v17 = vpack.c.bf16 %v1456_v6, %v1454_v12 }
 0x73d   :  { %1429 = vrot.lane.b32.xlu1 %v1811_v5, %s1837_s22  ;;  %v1418_v18 = vsel %vm53_vm3, %v1416_v7, %v1417_v13  ;;  %v1437_v19 = vsel %vm76_vm6, %v1435_v9, %v1436_v14  ;;  %v1411_v20 = vsel %vm44_vm5, %v1409_v4, %v1410_v15 }
 0x73e   :  { %v1448_v21 = vsel %vm90_vm1, %v1446_v11, %v1447_v16  ;;  %1452 = vst.msk [vmem:[#allocation2 + $0x38] sm:$0x3f] %vm97_vm2, %v1447_v16  ;;  %1702 = vmatprep.mubr.msk.bf16.mxu1 %vm30_vm0, %v1462_v17 }
 0x73f   :  { %1415 = vst.msk [vmem:[#allocation2 + $0x30] sm:$0xff] %vm30_vm0, %v1411_v20  ;;  %1451 = vst.msk [vmem:[#allocation2 + $0x28] sm:$0xff] %vm30_vm0, %v1448_v21  ;;  %1419 = vrot.lane.b32.xlu0 %v1416_v7, %s1841_s6 }
 0x741   :  { %1421 = vrot.lane.b32.xlu1 %v1418_v18, %s1841_s6 }
 0x743   :  { %1438 = vrot.lane.b32.xlu0 %v1437_v19, %s1842_s0 }
 0x745   :  { %1440 = vrot.lane.b32.xlu1 %v1436_v14, %s1842_s0  ;;  %v1460_v33 = vld [vmem:[#allocation2 + $0x38] sm:$0xff] }
 0x746   :  { %v1458_v32 = vld [vmem:[#allocation2 + $0x28] sm:$0xff] }
 0x747   :  { %v1464_v39 = vpack.c.bf16 %v1460_v33, %v1458_v32 }
 0x7a1   :  { %v1382_v22 = vpop.permute.xlu0 %1381 }
 0x7a3   :  { %v1384_v23 = vpop.permute.xlu1 %1383 }
 0x7a5   :  { %v1374_v24 = vpop.permute.xlu0 %1373 }
 0x7a6   :  { %1379 = vst.msk [vmem:[#allocation2] sm:$0xfe] %vm63_vm7, %v1374_v24 }
 0x7a7   :  { %1387 = vst.msk [vmem:[#allocation2] sm:$0xff] %vm73_vm8, %v1382_v22  ;;  %v1395_v25 = vpop.permute.xlu1 %1394 }
 0x7a9   :  { %v1393_v26 = vpop.permute.xlu0 %1392 }
 0x7aa   :  { %1398 = vst.msk [vmem:[#allocation2] sm:$0xff] %vm86_vm11, %v1393_v26 }
 0x7ab   :  { %v1376_v27 = vpop.permute.xlu1 %1375 }
 0x7ac   :  { %1380 = vst.msk [vmem:[#allocation2 + $0x10] sm:$0xff] %vm65_vm9, %v1376_v27 }
 0x7ad   :  { %1388 = vst.msk [vmem:[#allocation2 + $0x10] sm:$0xff] %vm73_vm8, %v1384_v23  ;;  %v1428_v28 = vpop.permute.xlu0 %1427 }
 0x7ae   :  { %1399 = vst.msk [vmem:[#allocation2 + $0x10] sm:$0x7f] %vm88_vm10, %v1395_v25 }
 0x7af   :  { %v1430_v29 = vpop.permute.xlu1 %1429 }
 0x7b1   :  { %v1420_v30 = vpop.permute.xlu0 %1419  ;;  %v1453_v35 = vld [vmem:[#allocation2] sm:$0xff] }
 0x7b2   :  { %1425 = vst.msk [vmem:[#allocation2 + $0x20] sm:$0xfe] %vm63_vm7, %v1420_v30 }
 0x7b3   :  { %1433 = vst.msk [vmem:[#allocation2 + $0x20] sm:$0xff] %vm73_vm8, %v1428_v28  ;;  %v1422_v31 = vpop.permute.xlu1 %1421 }
 0x7b4   :  { %1426 = vst.msk [vmem:[#allocation2 + $0x30] sm:$0xff] %vm65_vm9, %v1422_v31 }
 0x7b5   :  { %1434 = vst.msk [vmem:[#allocation2 + $0x30] sm:$0xff] %vm73_vm8, %v1430_v29  ;;  %v1439_v34 = vpop.permute.xlu0 %1438  ;;  %v1455_v36 = vld [vmem:[#allocation2 + $0x10] sm:$0xff] }
 0x7b6   :  { %1444 = vst.msk [vmem:[#allocation2 + $0x20] sm:$0xff] %vm86_vm11, %v1439_v34  ;;  %v1461_v37 = vpack.c.bf16 %v1455_v36, %v1453_v35 }
 0x7b7   :  { %v1441_v38 = vpop.permute.xlu1 %1440 }
 0x7b8   :  { %1445 = vst.msk [vmem:[#allocation2 + $0x30] sm:$0x7f] %vm88_vm10, %v1441_v38  ;;  %1585 = vmatmul.mubr.bf16.vlgmr.msra.gmra.mrb[16].mxu1 %v1461_v37 }
 0x7b9   :  { %1703 = vmatprep.mubr.msk.bf16.mxu1 %vm30_vm0, %v1464_v39 }
 0x7bd   :  { %v1457_v40 = vld [vmem:[#allocation2 + $0x20] sm:$0xff] }
 0x7bf   :  { %v1459_v41 = vld [vmem:[#allocation2 + $0x30] sm:$0xff] }
 0x7c0   :  { %v1463_v42 = vpack.c.bf16 %v1459_v41, %v1457_v40 }
 0x7c2   :  { %1593 = vmatmul.mubr.bf16.gmra.mrb[20].mxu1 %v1463_v42 }
 0x88b   :  { %v1586_v46 = vpop.f32.mrb[16].mxu1 }
 0x88c   :  { %v1607_v47 = vmul.f32 %v1606_v44, %v1586_v46  ;;  %v1588_v48 = vpop.f32.mrb[17].mxu1 }
 0x88d   :  { %v1589_v49 = vpop.f32.mrb[18].mxu1 }
 0x88e   :  { %v1615_v50 = vadd.f32 %v1614_v45, %v1607_v47  ;;  %v1608_v51 = vmul.f32 %v1606_v44, %v1589_v49  ;;  %v1591_v52 = vpop.f32.mrb[19].mxu1 }
 0x890   :  { %1619 = vst [vmem:[%s2254_s3] sm:$0xff] %v1615_v50  ;;  %v1616_v53 = vadd.f32 %v1614_v45, %v1608_v51 }
 0x892   :  { %1620 = vst [vmem:[%s2254_s3 + $0x8] sm:$0xff] %v1616_v53 }
 0x895   :  { %v1594_v54 = vpop.f32.mrb[20].mxu1 }
 0x896   :  { %v1609_v8 = vmul.f32 %v1606_v44, %v1594_v54  ;;  %v1596_v55 = vpop.f32.mrb[21].mxu1 }
 0x897   :  { %v1597_v10 = vpop.f32.mrb[22].mxu1 }
 0x898   :  { %v1617_v56 = vadd.f32 %v1614_v45, %v1609_v8  ;;  %v1610_v57 = vmul.f32 %v1606_v44, %v1597_v10  ;;  %v1599_v58 = vpop.f32.mrb[23].mxu1 }
 0x89a   :  { %1621 = vst [vmem:[%s2254_s3 + $0x10] sm:$0xff] %v1617_v56  ;;  %v1618_v59 = vadd.f32 %v1614_v45, %v1610_v57 }
 0x89c   :  { %1622 = vst [vmem:[%s2254_s3 + $0x18] sm:$0xff] %v1618_v59 }
 0x89d   :  { %1627 = vsyncpa [#allocation4], 1 }

</bundles_post_ra>
